<compile_context>
chip_gen: v7x
topology: tpu7x:2x2x1
jax: 0.10.0
libtpu: 0.0.40
codegen_flags: <defaults>
</compile_context>

<pallas_src>
import functools
import math

import jax
import jax.numpy as jnp
from jax import lax
from jax.experimental import pallas as pl
from jax.experimental.pallas import tpu as pltpu


def _round_up(x, m):
    return ((x + m - 1) // m) * m


def _renorm(table, max_norm=1.0, eps=1e-7):
    """PyTorch embedding_renorm_ semantics (rows with ||row|| > max_norm rescaled)."""
    norm = jnp.sqrt(jnp.sum(table * table, axis=-1, keepdims=True))
    scale = jnp.where(norm > max_norm, max_norm / (norm + eps), 1.0)
    return table * scale


def precompute_tables(w1, w2, w3):
    """Renorm the three tables and build the two block-diagonal tables for the kernel.

    Cache the result when the weights are static between calls (hoists 3 renorm
    reductions + zero-init + scatters out of the per-call path).
    """
    nf = w1.shape[1]
    v1, v2, v3 = w1.shape[0], w2.shape[0], w3.shape[0]
    out_pad = _round_up(3 * nf, 128)

    w1r, w2r, w3r = _renorm(w1), _renorm(w2), _renorm(w3)

    # Block A: the two small tables in the first 128-aligned K block.
    k_a = _round_up(v2 + v3, 128)
    tbl_a = jnp.zeros((k_a, out_pad), jnp.float32)
    tbl_a = tbl_a.at[:v2, nf:2 * nf].set(w2r)
    tbl_a = tbl_a.at[v2:v2 + v3, 2 * nf:3 * nf].set(w3r)

    # Block B: the large table (w1).
    k_b = _round_up(v1, 128)
    tbl_b = jnp.zeros((k_b, out_pad), jnp.float32)
    tbl_b = tbl_b.at[:v1, :nf].set(w1r)

    return (w1r, w2r, w3r, tbl_a, tbl_b)


def _mre_kernel(pk_ref, tbl_a_ref, tbl_b_ref, out_ref, *, bits_a):
    tile = pk_ref.shape[0]
    k_a = tbl_a_ref.shape[0]
    k_b = tbl_b_ref.shape[0]
    mask_a = (1 << bits_a) - 1

    packed = pk_ref[...]                                  # [tile, 1] int32
    o_a2 = packed & mask_a                                # w2 row (block A)
    o_a3 = (packed >> bits_a) & mask_a                    # w3 row (block A, already offset by v2)
    o_b1 = packed >> (2 * bits_a)                         # w1 row (block B, top field)

    # Block-structured one-hots: each iota block is compared only against the
    # offsets that can land in it (cuts compares/ORs and lane-broadcast width).
    iota_a = lax.broadcasted_iota(jnp.int32, (tile, k_a), 1)
    iota_b = lax.broadcasted_iota(jnp.int32, (tile, k_b), 1)
    oh_a = ((iota_a == o_a2) | (iota_a == o_a3)).astype(jnp.float32)
    oh_b = (iota_b == o_b1).astype(jnp.float32)

    # One-hot rows are exactly 0/1, so HIGHEST precision makes this an exact gather.
    acc = jnp.dot(oh_a, tbl_a_ref[...], preferred_element_type=jnp.float32,
                  precision=lax.Precision.HIGHEST)
    acc = acc + jnp.dot(oh_b, tbl_b_ref[...], preferred_element_type=jnp.float32,
                        precision=lax.Precision.HIGHEST)
    out_ref[...] = acc


def multi_resolution_embedding(idx, w1, w2, w3, *, tresolution, tscale,
                               tables=None, row_tile=1024,
                               min_rows_for_kernel=2048, force_kernel=False):
    """idx: float array [..., 1]. Returns [..., 3*nfeature] (float32)."""
    batch_shape = idx.shape[:-1]
    n = max(1, math.prod(batch_shape))
    nf = w1.shape[1]
    v1, v2, v3 = w1.shape[0], w2.shape[0], w3.shape[0]
    out_w = 3 * nf

    if tables is None:
        tables = precompute_tables(w1, w2, w3)
    w1r, w2r, w3r, tbl_a, tbl_b = tables
    k_a, out_pad = tbl_a.shape
    k_b = tbl_b.shape[0]

    # ---- wrapper-side index arithmetic (plain XLA elementwise ops) ----
    x = idx.reshape(n).astype(jnp.float32)
    idx1 = jnp.floor(x * tresolution).astype(jnp.int32)
    idx2 = jnp.floor(x / tscale).astype(jnp.int32)
    o1 = (idx1 // 24) % v1
    o2 = idx1 % v2
    # Clamp like a JAX gather; PyTorch would raise for out-of-range values.
    o3 = jnp.clip(idx2, 0, v3 - 1)

    if not force_kernel and n < min_rows_for_kernel:
        # Small-N fast path: a fused XLA gather beats the kernel at tiny N and is exact.
        e = jnp.concatenate([w1r[o1], w2r[o2], w3r[o3]], axis=-1)
        return e.reshape(*batch_shape, out_w)

    # ---- pack the three per-row offsets into one lane-dense int32 ----
    bits_a = (k_a - 1).bit_length()
    bits_b = (k_b - 1).bit_length()
    assert 2 * bits_a + bits_b <= 31, "offset fields do not fit in int32"
    packed = (o2 | ((v2 + o3) << bits_a) | (o1 << (2 * bits_a))).astype(jnp.int32)
    packed = packed.reshape(n, 1)

    # ---- row tiling: big tiles, but force >= 2 grid steps for v7x megacore ----
    tile = min(row_tile, _round_up(n, 8))
    if _round_up(n, tile) // tile < 2 and n >= 16:
        tile = _round_up((n + 1) // 2, 8)
    n_pad = _round_up(n, tile)
    if n_pad > n:
        packed = jnp.concatenate([packed, jnp.zeros((n_pad - n, 1), jnp.int32)], axis=0)

    # Rough double-buffered VMEM budget with margin (v5e default scoped VMEM is 16 MiB).
    est = 4 * (3 * tile * 128 + 2 * (k_a + k_b) * out_pad
               + 3 * tile * out_pad + 3 * tile * (k_a + k_b))
    vmem_limit = int(min(48 * 2 ** 20, max(32 * 2 ** 20, 2 * est)))

    kernel = functools.partial(_mre_kernel, bits_a=bits_a)
    out = pl.pallas_call(
        kernel,
        out_shape=jax.ShapeDtypeStruct((n_pad, out_pad), jnp.float32),
        grid=(n_pad // tile,),
        in_specs=[
            pl.BlockSpec((tile, 1), lambda i: (i, 0)),          # packed offsets, tiled over rows
            pl.BlockSpec((k_a, out_pad), lambda i: (0, 0)),     # block-A table (grid-invariant)
            pl.BlockSpec((k_b, out_pad), lambda i: (0, 0)),     # block-B table (grid-invariant)
        ],
        out_specs=pl.BlockSpec((tile, out_pad), lambda i: (i, 0)),
        compiler_params=pltpu.CompilerParams(
            dimension_semantics=("parallel",),
            vmem_limit_bytes=vmem_limit,
        ),
    )(packed, tbl_a, tbl_b)

    return out[:n, :out_w].reshape(*batch_shape, out_w)


def reference_forward(idx, w1, w2, w3, *, tresolution, tscale):
    """Pure-JAX reference mirroring the PyTorch forward (for validation)."""
    x = idx[..., 0]
    idx1 = jnp.floor(x * tresolution).astype(jnp.int32)
    idx2 = jnp.floor(x / tscale).astype(jnp.int32)
    e1 = _renorm(w1)[(idx1 // 24) % w1.shape[0]]
    e2 = _renorm(w2)[idx1 % w2.shape[0]]
    e3 = _renorm(w3)[jnp.clip(idx2, 0, w3.shape[0] - 1)]
    return jnp.concatenate([e1, e2, e3], axis=-1)


if __name__ == "__main__":
    # Module hyperparameters (small, consistent with the PyTorch __init__).
    feature_size = 128
    nfeature = 32
    tresolution = 24.0
    tscale = 4.0
    vocab3 = int(feature_size / tscale)   # 32

    key = jax.random.PRNGKey(0)
    k_idx, k_idx2, k1, k2, k3 = jax.random.split(key, 5)

    # nn.Embedding default init: N(0, 1). Rows typically exceed norm 1, so the
    # max_norm renorm path is exercised.
    w1 = jax.random.normal(k1, (366, nfeature), dtype=jnp.float32)
    w2 = jax.random.normal(k2, (24, nfeature), dtype=jnp.float32)
    w3 = jax.random.normal(k3, (vocab3, nfeature), dtype=jnp.float32)

    # Float "time" indices in [0, feature_size) so all lookups are in range.
    B, S = 2, 8
    idx = jax.random.uniform(k_idx, (B, S, 1), dtype=jnp.float32,
                             minval=0.0, maxval=float(feature_size))
    ref = reference_forward(idx, w1, w2, w3, tresolution=tresolution, tscale=tscale)

    # (1) Pallas kernel path (forced; default dispatch would pick the small-N fast path).
    out_k = multi_resolution_embedding(idx, w1, w2, w3, tresolution=tresolution,
                                       tscale=tscale, force_kernel=True)
    out_k = jax.block_until_ready(out_k)
    assert out_k.shape == (B, S, 3 * nfeature), out_k.shape
    assert jnp.allclose(out_k, ref, atol=1e-5, rtol=1e-5), "kernel mismatch vs reference"

    # (2) Default dispatch at tiny N: XLA gather fast path.
    out_f = multi_resolution_embedding(idx, w1, w2, w3, tresolution=tresolution, tscale=tscale)
    out_f = jax.block_until_ready(out_f)
    assert jnp.allclose(out_f, ref, atol=1e-6, rtol=1e-6), "fast-path mismatch vs reference"

    # (3) Larger non-multiple-of-tile case through the kernel: exercises row padding
    #     and the >= 2-grid-step megacore split.
    B2, S2 = 3, 100
    idx2 = jax.random.uniform(k_idx2, (B2, S2, 1), dtype=jnp.float32,
                              minval=0.0, maxval=float(feature_size))
    out_k2 = multi_resolution_embedding(idx2, w1, w2, w3, tresolution=tresolution,
                                        tscale=tscale, force_kernel=True)
    out_k2 = jax.block_until_ready(out_k2)
    ref2 = reference_forward(idx2, w1, w2, w3, tresolution=tresolution, tscale=tscale)
    assert jnp.allclose(out_k2, ref2, atol=1e-5, rtol=1e-5), "padded-case mismatch vs reference"

    print("KERNEL_OK")
</pallas_src>

<mosaic_0001>
module attributes {stable_mosaic.version = 11 : i64} {
  func.func @_mre_kernel(%arg0: i32, %arg1: memref<8x1xi32, #tpu.memory_space<vmem>>, %arg2: memref<128x128xf32, #tpu.memory_space<vmem>>, %arg3: memref<384x128xf32, #tpu.memory_space<vmem>>, %arg4: memref<8x128xf32, #tpu.memory_space<vmem>>) attributes {dimension_semantics = [#tpu.dimension_semantics<parallel>], iteration_bounds = array<i64: 2>, scalar_prefetch = 0 : i64, scratch_operands = 0 : i64, tpu.core_type = #tpu.core_type<tc>, window_params = [{transform_indices = @transform_0, window_bounds = array<i64: 8, 1>}, {pipeline_mode = #tpu.pipeline_mode<synchronous>, transform_indices = @transform_1, window_bounds = array<i64: 128, 128>}, {pipeline_mode = #tpu.pipeline_mode<synchronous>, transform_indices = @transform_2, window_bounds = array<i64: 384, 128>}, {transform_indices = @transform_3, window_bounds = array<i64: 8, 128>}]} {
    %c0 = arith.constant 0 : index
    %c0_0 = arith.constant 0 : index
    %0 = vector.load %arg1[%c0, %c0_0] : memref<8x1xi32, #tpu.memory_space<vmem>>, vector<8x1xi32>
    %c127_i32 = arith.constant 127 : i32
    %1 = vector.broadcast %c127_i32 : i32 to vector<8x1xi32>
    %2 = arith.andi %0, %1 : vector<8x1xi32>
    %c7_i32 = arith.constant 7 : i32
    %3 = vector.broadcast %c7_i32 : i32 to vector<8x1xi32>
    %4 = arith.shrsi %0, %3 : vector<8x1xi32>
    %c127_i32_1 = arith.constant 127 : i32
    %5 = vector.broadcast %c127_i32_1 : i32 to vector<8x1xi32>
    %6 = arith.andi %4, %5 : vector<8x1xi32>
    %c14_i32 = arith.constant 14 : i32
    %7 = vector.broadcast %c14_i32 : i32 to vector<8x1xi32>
    %8 = arith.shrsi %0, %7 : vector<8x1xi32>
    %9 = tpu.iota {dimensions = array<i32: 1>} : vector<8x128xi32>
    %10 = tpu.iota {dimensions = array<i32: 1>} : vector<8x384xi32>
    %11 = vector.broadcast %2 : vector<8x1xi32> to vector<8x128xi32>
    %12 = arith.cmpi eq, %9, %11 : vector<8x128xi32>
    %13 = vector.broadcast %6 : vector<8x1xi32> to vector<8x128xi32>
    %14 = arith.cmpi eq, %9, %13 : vector<8x128xi32>
    %15 = arith.ori %12, %14 : vector<8x128xi1>
    %16 = arith.extui %15 : vector<8x128xi1> to vector<8x128xi32>
    %17 = arith.sitofp %16 : vector<8x128xi32> to vector<8x128xf32>
    %18 = vector.broadcast %8 : vector<8x1xi32> to vector<8x384xi32>
    %19 = arith.cmpi eq, %10, %18 : vector<8x384xi32>
    %20 = arith.extui %19 : vector<8x384xi1> to vector<8x384xi32>
    %21 = arith.sitofp %20 : vector<8x384xi32> to vector<8x384xf32>
    %c0_2 = arith.constant 0 : index
    %c0_3 = arith.constant 0 : index
    %22 = vector.load %arg2[%c0_2, %c0_3] : memref<128x128xf32, #tpu.memory_space<vmem>>, vector<128x128xf32>
    %cst = arith.constant dense<0.000000e+00> : vector<8x128xf32>
    %23 = tpu.matmul %17, %22, %cst {dimension_numbers = #tpu.dot_dimension_numbers<[1], [0], [0], [1], [0, 0, 1, 1], [], []>, precision = #tpu.contract_precision<fp32>} : vector<8x128xf32>, vector<128x128xf32>, vector<8x128xf32> -> vector<8x128xf32>
    %c0_4 = arith.constant 0 : index
    %c0_5 = arith.constant 0 : index
    %24 = vector.load %arg3[%c0_4, %c0_5] : memref<384x128xf32, #tpu.memory_space<vmem>>, vector<384x128xf32>
    %cst_6 = arith.constant dense<0.000000e+00> : vector<8x128xf32>
    %25 = tpu.matmul %21, %24, %cst_6 {dimension_numbers = #tpu.dot_dimension_numbers<[1], [0], [0], [1], [0, 0, 1, 1], [], []>, precision = #tpu.contract_precision<fp32>} : vector<8x384xf32>, vector<384x128xf32>, vector<8x128xf32> -> vector<8x128xf32>
    %26 = arith.addf %23, %25 : vector<8x128xf32>
    %c0_7 = arith.constant 0 : index
    %c0_8 = arith.constant 0 : index
    %27 = vector.load %arg4[%c0_7, %c0_8] : memref<8x128xf32, #tpu.memory_space<vmem>>, vector<8x128xf32>
    tpu.vector_store %arg4[%c0_7, %c0_8], %26 {strides = array<i32>} : memref<8x128xf32, #tpu.memory_space<vmem>>, vector<8x128xf32>,
    return
  }
  func.func @transform_0(%arg0: i32) -> (i32, i32) {
    %c0_i32 = arith.constant 0 : i32
    %c0_i32_0 = arith.constant 0 : i32
    return %arg0, %c0_i32 : i32, i32
  }
  func.func @transform_1(%arg0: i32) -> (i32, i32) {
    %c0_i32 = arith.constant 0 : i32
    %c0_i32_0 = arith.constant 0 : i32
    %c0_i32_1 = arith.constant 0 : i32
    return %c0_i32, %c0_i32_0 : i32, i32
  }
  func.func @transform_2(%arg0: i32) -> (i32, i32) {
    %c0_i32 = arith.constant 0 : i32
    %c0_i32_0 = arith.constant 0 : i32
    %c0_i32_1 = arith.constant 0 : i32
    return %c0_i32, %c0_i32_0 : i32, i32
  }
  func.func @transform_3(%arg0: i32) -> (i32, i32) {
    %c0_i32 = arith.constant 0 : i32
    %c0_i32_0 = arith.constant 0 : i32
    return %arg0, %c0_i32 : i32, i32
  }
}

</mosaic_0001>

<bundles_post_ra>
// kernel: tpu_custom_call.1
= control target key start
LH: loop header
LB: loop body
LE: loop exit
PB: predicated region body
PF: predicated region fallthrough
CT: control target
= control target key end

     0   :  { %8 = vsyncpa [#allocation3], 0  ;;  %s5448_s0 = inlined_call_operand.vmem [shape: s32[16,1], index: 0, kind: input, shape index: {}]   ;;  %s5449_s1 = inlined_call_operand.hbm [shape: f32[128,128], index: 1, kind: input, shape index: {}]   ;;  %s5450_s2 = inlined_call_operand.hbm [shape: f32[384,128], index: 2, kind: input, shape index: {}]   ;;  %s5451_s3 = inlined_call_operand.hbm [shape: f32[16,128], index: 3, kind: output, shape index: {}]  }
   0x1   :  { %9 = vsyncpa [#allocation6], 0 }
   0x2   :  { %10 = vsyncpa [#allocation4], 0 }
   0x3   :  { %12 = vsyncpa [#allocation4 + $0x1], 0  ;;  %s4125_s12 = smov 0   ;;  %s4127_s13 = smov 0  }
   0x4   :  { %s4129_s14 = smov 0   ;;  %s4131_s15 = smov 0  }
   0x5 LB: > { %s4146_s16 = sadd.s32 4294967295, %s4093_s15   ;;  %s2532_s17 = sadd.s32 4294967294, %s4093_s15   ;;  %s4093_s15 = sphi %s4131_s15, %s5930_s15   ;;  %s4089_s14 = sphi %s4129_s14, %s5929_s14   ;;  %s4085_s13 = sphi %s4127_s13, %s5928_s13   ;;  %s4081_s12 = sphi %s4125_s12, %s5927_s12  }
   0x6   : > { %s4150_s18 = sadd.s32 1, %s4093_s15   ;;  %s93_s19 = sadd.s32 1, %s4089_s14 }
   0x7   : > { %s90_s20 = ssub.s32 %s4093_s15, %s4150_s18  ;;  %p103_p0 = scmp.ne.s32.totalorder %s4089_s14, %s4085_s13 }
   0x8   : > { %p91_p1 = scmp.eq.s32.totalorder %s90_s20, 0  ;;  %p104_p2 = scmp.eq.s32.totalorder %s4146_s16, 1 }
   0x9   : > { %p109_p3 = scmp.ne.s32.totalorder %s4085_s13, %s4081_s12  ;;  %p110_p4 = scmp.eq.s32.totalorder %s2532_s17, 1 }
   0xa   : > { %s4161_s21 = scalar_select %p91_p1, %s4089_s14, %s93_s19  }
   0xb   : > { %p4163_p5 = por %p104_p2, %p103_p0  ;;  %p4167_p6 = por %p110_p4, %p109_p3 }
   0xc   : > { %p2533_p7 = scmp.ge.s32.totalorder %s4093_s15, 1  ;;  %p117_p8 = scmp.lt.s32.totalorder %s4093_s15, 3 }
   0xd   : > { %s5637_s22 = scalar_select %p4163_p5, 1, 0 }
   0xe   : > { %s5638_s23 = scalar_select %p4167_p6, 1, 0 }
   0xf   : > { %p5452_p9 = scmp.eq.s32.totalorder %s4146_s16, 0  ;;  %p4174_p10 = pnand %p2533_p7, %p117_p8 }
  0x10   : > { %s4095_s25 = smov [#allocation2]   ;;  %s4096_s28 = smov [#allocation5]  }
  0x11   : > { %s5639_s24 = scalar_select %p4174_p10, 1, 0 }
  0x12   : > { %s129_s26 = sshll.u32 %s4095_s25, 4  ;;  %p3908_p11 = pneg %p4174_p10  ;;  %s130_s26 = int_to_ptr.vmem [resolvable:$true] %s129_s26 }
  0x13   : > { %s142_s29 = sshll.u32 %s4096_s28, 4  ;;  %s3967_s5 = scalar_lea.hbm %s5449_s1, 2048  ;;  %s4186_s29 = int_to_ptr.vmem [resolvable:$true] %s142_s29 }
  0x14   : > { %p4182_p12 = pnand %p5452_p9, %p3908_p11  ;;  %p3968_p13 = scmp.ne.s32.totalorder %s5449_s1, %s3967_s5 }
  0x15   : > { %p3974_p3 = scmp.lt.u32.totalorder %s3967_s5, %s5449_s1 }
  0x16   : > { %p3969_p0 = pneg %p4182_p12 }
  0x18   : > { %p3970_p1 = pnand %p3969_p0, %p3968_p13 }
  0x1a   : > { %p3971_p2 = pneg %p3970_p1 }
  0x1c   : > { %p3976_p4 = pnand %p3974_p3, %p3971_p2 }
  0x1e   : > { %3979 = shalt.err (!%p3976_p4)
}
  0x1f   : > { %s3980_s10 = scalar_lea.vmem %s130_s26, 2048  ;;  %p3988_p9 = scmp.lt.s32.totalorder %s130_s26, %s130_s26 }
  0x20   : > { %p3981_p7 = scmp.ne.s32.totalorder %s130_s26, %s3980_s10  ;;  %p3989_p6 = scmp.lt.s32.totalorder %s3980_s10, %s3980_s10 }
  0x22   : > { %p3983_p8 = pnand %p3981_p7, %p3969_p0  ;;  %p3990_p5 = por %p3989_p6, %p3988_p9 }
  0x24   : > { %p3984_p11 = pneg %p3983_p8 }
  0x26   : > { %p3991_p10 = pnand %p3990_p5, %p3984_p11 }
  0x28   : > { %3994 = shalt.err (!%p3991_p10)
}
  0x29   : > { %s4097_s11 = smov 128   ;;  %s4098_s17 = smov 8  }
  0x2a   : > { %3911 = dma.hbm_to_vmem [thread:$0]  (!%p4182_p12), %s5449_s1, 2048, %s130_s26, [#allocation3], %s4097_s11, %s4097_s11, %s4098_s17  }
  0x2b   : > { %s3995_s30 = scalar_lea.hbm %s5450_s2, 6144 }
  0x2c   : > { %p3996_p13 = scmp.ne.s32.totalorder %s5450_s2, %s3995_s30  ;;  %p4002_p9 = scmp.lt.u32.totalorder %s3995_s30, %s5450_s2 }
  0x2e   : > { %p3998_p5 = pnand %p3996_p13, %p3969_p0 }
  0x30   : > { %p3999_p6 = pneg %p3998_p5 }
  0x32   : > { %p4004_p10 = pnand %p4002_p9, %p3999_p6 }
  0x34   : > { %4007 = shalt.err (!%p4004_p10)
}
  0x35   : > { %s4008_s26 = scalar_lea.vmem %s4186_s29, 6144  ;;  %p4016_p4 = scmp.lt.s32.totalorder %s4186_s29, %s4186_s29 }
  0x36   : > { %p4009_p1 = scmp.ne.s32.totalorder %s4186_s29, %s4008_s26  ;;  %p4017_p7 = scmp.lt.s32.totalorder %s4008_s26, %s4008_s26 }
  0x38   : > { %p4011_p2 = pnand %p4009_p1, %p3969_p0  ;;  %p4018_p8 = por %p4017_p7, %p4016_p4 }
  0x3a   : > { %p4012_p3 = pneg %p4011_p2 }
  0x3c   : > { %p4019_p11 = pnand %p4018_p8, %p4012_p3 }
  0x3e   : > { %4022 = shalt.err (!%p4019_p11)
}
  0x3f   : > { %3914 = dma.hbm_to_vmem [thread:$0]  (!%p4182_p12), %s5450_s2, 6144, %s4186_s29, [#allocation6], %s4097_s11, %s4097_s11, %s4098_s17  }
  0x40   : > { %p5641_p13 = scmp.ne.s32.totalorder %s5639_s24, 0 }
  0x42   : > { %165 = sbr.rel (%p5641_p13) target bundleno = 714 (0x2ca), region = 32 }
  0x49   : > { %p5642_p5 = scmp.eq.s32.totalorder %s4146_s16, 0 }
  0x4b   : > { %4068 = dma.done.wait (%p5642_p5), [#allocation3], 2048   ;;  %p5643_p0 = pmov %p5642_p5 }
  0x4d   : > { %4070 = vsyncadd (%p5643_p0), [#allocation3], 4294965248  ;;  %p5644_p6 = pmov %p5643_p0 }
  0x4e   : > { %p5645_p9 = pmov %p5643_p0 }
  0x4f   : > { %4072 = dma.done.wait (%p5644_p6), [#allocation6], 6144  }
  0x50   : > { %4074 = vsyncadd (%p5645_p9), [#allocation6], 4294961152  ;;  %p192_p10 = scmp.lt.s32.totalorder %s4146_s16, 1  ;;  %v4099_v0 = vmov 0   ;;  %v5455_v1 = vmov 0.0|0.0   ;;  %v276_v3 = vld [vmem:[#allocation5 + $0x100] sm:$0xff] }
  0x51   : > { %3965 = vset.pattern.permute.xlu0 %v4099_v0  ;;  %3966 = vset.pattern.permute.xlu1 %v4099_v0  ;;  %v277_v4 = vld [vmem:[#allocation5 + $0x108] sm:$0xff]  ;;  %v1155_v8 = vand.u32 4294901760, %v276_v3  ;;  %v260_v9 = vld [vmem:[#allocation5 + $0x80] sm:$0xff]  ;;  %v278_v14 = vld [vmem:[#allocation5 + $0x110] sm:$0xff]  ;;  %vm4101_vm0 = vmmov 0   ;;  %s189_s17 = sand.u32 1, %s4085_s13  }
  0x52   : > { %s193_s24 = scalar_select %p192_p10, %s4146_s16, 1  ;;  %3660 = vmatprep.subr.bf16.mxu0 %v5455_v1  ;;  %v261_v10 = vld [vmem:[#allocation5 + $0x88] sm:$0xff]  ;;  %v1158_v11 = vand.u32 4294901760, %v277_v4  ;;  %v341_v12 = vand.u32 4294901760, %v260_v9  ;;  %v279_v15 = vld [vmem:[#allocation5 + $0x118] sm:$0xff]  ;;  %v244_v16 = vld [vmem:[#allocation5] sm:$0xff] }
  0x53   : > { %v344_v13 = vand.u32 4294901760, %v261_v10  ;;  %v4251_v18 = vsub.f32 %v276_v3, %v1155_v8  ;;  %v1161_v19 = vand.u32 4294901760, %v278_v14  ;;  %v1164_v20 = vand.u32 4294901760, %v279_v15  ;;  %v245_v21 = vld [vmem:[#allocation5 + $0x8] sm:$0xff]  ;;  %v262_v22 = vld [vmem:[#allocation5 + $0x90] sm:$0xff]  ;;  %v263_v23 = vld [vmem:[#allocation5 + $0x98] sm:$0xff] }
  0x54   : > { %s2541_s27 = sshll.u32 %s193_s24, 3  ;;  %v4253_v24 = vpack.c.bf16 %v1158_v11, %v1155_v8  ;;  %v4255_v25 = vsub.f32 %v277_v4, %v1158_v11  ;;  %v4259_v27 = vsub.f32 %v260_v9, %v341_v12  ;;  %v280_v28 = vld [vmem:[#allocation5 + $0x120] sm:$0xff]  ;;  %v281_v29 = vld [vmem:[#allocation5 + $0x128] sm:$0xff]  ;;  %v246_v30 = vld [vmem:[#allocation5 + $0x10] sm:$0xff]  ;;  %v293_v36 = vand.u32 4294901760, %v244_v16  ;;  %s2540_s19 = sshll.u32 %s189_s17, 3 }
  0x55   : > { %s195_s11 = scalar_lea.vmem %s5448_s0, %s2541_s27  ;;  %5646 = vst [vmem:[#allocation11_spill] sm:$0xff] %v4251_v18  ;;  %v4257_v26 = vpack.c.bf16 %v344_v13, %v341_v12  ;;  %v4261_v31 = vsub.f32 %v261_v10, %v344_v13  ;;  %v4263_v32 = vpack.c.bf16 %v1164_v20, %v1161_v19  ;;  %v4265_v33 = vsub.f32 %v278_v14, %v1161_v19  ;;  %v247_v35 = vld [vmem:[#allocation5 + $0x18] sm:$0xff]  ;;  %v264_v44 = vld [vmem:[#allocation5 + $0xa0] sm:$0xff]  ;;  %v265_v49 = vld [vmem:[#allocation5 + $0xa8] sm:$0xff]  ;;  %s2559_s20 = sshll.u32 %s4146_s16, 7 }
  0x56   : > { %v196_v2 = vld [vmem:[%s195_s11] sm:$0xff]  ;;  %5647 = vst [vmem:[#allocation12_spill] sm:$0xff] %v4253_v24  ;;  %5648 = vst [vmem:[#allocation13_spill] sm:$0xff] %v4255_v25  ;;  %v4267_v34 = vsub.f32 %v279_v15, %v1164_v20  ;;  %3662 = vmatpush3.bf16.msra.mxu0 %v4253_v24  ;;  %v296_v37 = vand.u32 4294901760, %v245_v21  ;;  %v347_v38 = vand.u32 4294901760, %v262_v22  ;;  %v350_v39 = vand.u32 4294901760, %v263_v23  ;;  %s5406_s5 = scalar_lea.hbm %s5451_s3, %s2559_s20 }
  0x57   : > { %v200_v5 = vshra.s32 %v196_v2, 14  ;;  %v198_v6 = vshra.s32 %v196_v2, 7  ;;  %v197_v7 = vand.u32 127, %v196_v2  ;;  %5649 = vst [vmem:[#allocation14_spill] sm:$0xff] %v4257_v26  ;;  %5650 = vst [vmem:[#allocation15_spill] sm:$0xff] %v4263_v32  ;;  %3397 = vmatprep.subr.bf16.mxu1 %v4257_v26  ;;  %3663 = vmatprep.subr.bf16.mxu0 %v5455_v1  ;;  %v1167_v40 = vand.u32 4294901760, %v280_v28 }
  0x58   : > { %5651 = vst [vmem:[#allocation16_spill] sm:$0xff] %v4265_v33  ;;  %5652 = vst [vmem:[#allocation17_spill] sm:$0xff] %v4267_v34  ;;  %v1170_v41 = vand.u32 4294901760, %v281_v29  ;;  %v299_v42 = vand.u32 4294901760, %v246_v30  ;;  %v302_v43 = vand.u32 4294901760, %v247_v35  ;;  %v4272_v45 = vpack.c.bf16 %v296_v37, %v293_v36  ;;  %v282_v50 = vld [vmem:[#allocation5 + $0x130] sm:$0xff] }
  0x59   : > { %217 = vperm.xlu0 %3965, %v200_v5   ;;  %v199_v17 = vand.u32 127, %v198_v6  ;;  %v4274_v46 = vsub.f32 %v244_v16, %v293_v36  ;;  %v4276_v47 = vsub.f32 %v245_v21, %v296_v37  ;;  %v4278_v48 = vpack.c.bf16 %v350_v39, %v347_v38  ;;  %v283_v51 = vld [vmem:[#allocation5 + $0x138] sm:$0xff]  ;;  %v248_v56 = vld [vmem:[#allocation5 + $0x20] sm:$0xff]  ;;  %v249_v57 = vld [vmem:[#allocation5 + $0x28] sm:$0xff]  ;;  %s191_s25 = scalar_lea.vmem [#allocation7], %s2540_s19  ;;  %s2438_s6 = scalar_lea.sflag [#allocation4], %s189_s17 }
  0x5a   : > { %5653 = vst [vmem:[#allocation18_spill] sm:$0xff] %v4272_v45  ;;  %v4280_v52 = vsub.f32 %v262_v22, %v347_v38  ;;  %v4282_v53 = vsub.f32 %v263_v23, %v350_v39  ;;  %v4284_v54 = vpack.c.bf16 %v1170_v41, %v1167_v40  ;;  %v4286_v55 = vsub.f32 %v280_v28, %v1167_v40  ;;  %v266_v58 = vld [vmem:[#allocation5 + $0xb0] sm:$0xff]  ;;  %v267_v4 = vld [vmem:[#allocation5 + $0xb8] sm:$0xff]  ;;  %v284_v9 = vld [vmem:[#allocation5 + $0x140] sm:$0xff]  ;;  %s2451_s28 = sshll.u32 %s191_s25, 4  ;;  %p5925_p1 = scmp.ne.s32.totalorder %s5637_s22, 0  ;;  %s5408_s28 = int_to_ptr.vmem [resolvable:$true] %s2451_s28 }
  0x5b   : > { %210 = vperm.xlu1 %3966, %v199_v17   ;;  %5654 = vst [vmem:[#allocation19_spill] sm:$0xff] %v4278_v48  ;;  %3665 = vmatpush3.bf16.msra.mxu0 %v4263_v32  ;;  %v4290_v59 = vsub.f32 %v281_v29, %v1170_v41  ;;  %v4292_v60 = vpack.c.bf16 %v302_v43, %v299_v42  ;;  %v353_v62 = vand.u32 4294901760, %v264_v44  ;;  %v356_v0 = vand.u32 4294901760, %v265_v49  ;;  %v285_v10 = vld [vmem:[#allocation5 + $0x148] sm:$0xff]  ;;  %v250_v15 = vld [vmem:[#allocation5 + $0x30] sm:$0xff]  ;;  %v251_v16 = vld [vmem:[#allocation5 + $0x38] sm:$0xff] }
  0x5c   : > { %5655 = vst [vmem:[#allocation20_spill] sm:$0xff] %v4284_v54  ;;  %5656 = vst [vmem:[#allocation21_spill] sm:$0xff] %v4286_v55  ;;  %3399 = vmatpush3.bf16.msra.mxu1 %v4272_v45  ;;  %v4294_v61 = vsub.f32 %v246_v30, %v299_v42  ;;  %3666 = vmatprep.subr.bf16.mxu0 %v5455_v1  ;;  %v4298_v63 = vsub.f32 %v247_v35, %v302_v43  ;;  %v1173_v2 = vand.u32 4294901760, %v282_v50  ;;  %v268_v22 = vld [vmem:[#allocation5 + $0xc0] sm:$0xff]  ;;  %v269_v35 = vld [vmem:[#allocation5 + $0xc8] sm:$0xff]  ;;  %s4023_s7 = scalar_lea.vmem %s5408_s28, 128 }
  0x5d   : > { %206 = vperm.xlu0 %3965, %v197_v7   ;;  %5657 = vst [vmem:[#allocation22_spill] sm:$0xff] %v4290_v59  ;;  %5658 = vst [vmem:[#allocation23_spill] sm:$0xff] %v4292_v60  ;;  %3401 = vmatprep.subr.bf16.mxu1 %v4278_v48  ;;  %v1176_v3 = vand.u32 4294901760, %v283_v51  ;;  %v4300_v5 = vsub.f32 %v264_v44, %v353_v62  ;;  %v305_v6 = vand.u32 4294901760, %v248_v56  ;;  %v308_v7 = vand.u32 4294901760, %v249_v57  ;;  %v286_v40 = vld [vmem:[#allocation5 + $0x150] sm:$0xff]  ;;  %p4024_p12 = scmp.ne.s32.totalorder %s5408_s28, %s4023_s7 }
  0x5e   : > { %v359_v8 = vand.u32 4294901760, %v266_v58  ;;  %v4302_v11 = vpack.c.bf16 %v356_v0, %v353_v62  ;;  %v4304_v12 = vsub.f32 %v265_v49, %v356_v0  ;;  %v4308_v14 = vsub.f32 %v282_v50, %v1173_v2  ;;  %v287_v41 = vld [vmem:[#allocation5 + $0x158] sm:$0xff]  ;;  %v252_v42 = vld [vmem:[#allocation5 + $0x40] sm:$0xff]  ;;  %s4104_s16 = smov [#allocation7]  }
  0x5f   : > { %v4306_v13 = vpack.c.bf16 %v1176_v3, %v1173_v2  ;;  %3668 = vmatpush3.bf16.msra.mxu0 %v4284_v54  ;;  %v4312_v17 = vsub.f32 %v283_v51, %v1176_v3  ;;  %v4314_v19 = vpack.c.bf16 %v308_v7, %v305_v6  ;;  %v4316_v20 = vsub.f32 %v248_v56, %v305_v6  ;;  %v253_v51 = vld [vmem:[#allocation5 + $0x48] sm:$0xff]  ;;  %v270_v56 = vld [vmem:[#allocation5 + $0xd0] sm:$0xff]  ;;  %v275_v24 = vld [vmem:[#allocation5 + $0xf8] sm:$0xff]  ;;  %p4025_p2 = pnand %p4024_p12, %p5925_p1  ;;  %s4027_s26 = sshll.u32 %s4104_s16, 4  ;;  %s4028_s26 = int_to_ptr.vmem [resolvable:$false] %s4027_s26 }
  0x60   : > { %5659 = vst [vmem:[#allocation24_spill] sm:$0xff] %v4302_v11  ;;  %5661 = vst [vmem:[#allocation26_spill] sm:$0xff] %v4308_v14  ;;  %3403 = vmatpush3.bf16.msra.mxu1 %v4292_v60  ;;  %v362_v21 = vand.u32 4294901760, %v267_v4  ;;  %3669 = vmatprep.subr.bf16.mxu0 %v5455_v1  ;;  %v4320_v23 = vsub.f32 %v249_v57, %v308_v7  ;;  %v4322_v28 = vsub.f32 %v266_v58, %v359_v8  ;;  %v271_v7 = vld [vmem:[#allocation5 + $0xd8] sm:$0xff]  ;;  %v5674_v60 = vmov 0.0|0.0   ;;  %v274_v54 = vld [vmem:[#allocation5 + $0xf0] sm:$0xff]  ;;  %p4030_p4 = scmp.lt.s32.totalorder %s5408_s28, %s4028_s26 }
  0x61   : > { %5660 = vst [vmem:[#allocation25_spill] sm:$0xff] %v4306_v13  ;;  %5662 = vst [vmem:[#allocation27_spill] sm:$0xff] %v4312_v17  ;;  %3405 = vmatprep.subr.bf16.mxu1 %v4302_v11  ;;  %v1179_v29 = vand.u32 4294901760, %v284_v9  ;;  %v1182_v30 = vand.u32 4294901760, %v285_v10  ;;  %v311_v38 = vand.u32 4294901760, %v250_v15  ;;  %v314_v39 = vand.u32 4294901760, %v251_v16  ;;  %p4026_p3 = pneg %p4025_p2 }
  0x62   : > { %5663 = vst [vmem:[#allocation28_spill] sm:$0xff] %v4314_v19  ;;  %v4324_v36 = vpack.c.bf16 %v362_v21, %v359_v8  ;;  %v4326_v37 = vsub.f32 %v267_v4, %v362_v21  ;;  %v365_v50 = vand.u32 4294901760, %v268_v22  ;;  %v368_v0 = vand.u32 4294901760, %v269_v35  ;;  %v288_v8 = vld [vmem:[#allocation5 + $0x160] sm:$0xff]  ;;  %s4029_s8 = scalar_lea.vmem %s4028_s26, 256 }
  0x63   : > { %v4328_v43 = vpack.c.bf16 %v1182_v30, %v1179_v29  ;;  %v4330_v44 = vsub.f32 %v284_v9, %v1179_v29  ;;  %v4332_v49 = vsub.f32 %v285_v10, %v1182_v30  ;;  %3671 = vmatpush3.bf16.msra.mxu0 %v4306_v13  ;;  %v4336_v57 = vpack.c.bf16 %v314_v39, %v311_v38  ;;  %v254_v29 = vld [vmem:[#allocation5 + $0x50] sm:$0xff]  ;;  %v255_v30 = vld [vmem:[#allocation5 + $0x58] sm:$0xff]  ;;  %v257_v13 = vld [vmem:[#allocation5 + $0x68] sm:$0xff]  ;;  %p4031_p7 = scmp.lt.s32.totalorder %s4029_s8, %s4023_s7 }
  0x64   : > { %5664 = vst [vmem:[#allocation29_spill] sm:$0xff] %v4324_v36  ;;  %3407 = vmatpush3.bf16.msra.mxu1 %v4314_v19  ;;  %v4338_v58 = vsub.f32 %v250_v15, %v311_v38  ;;  %v4340_v62 = vsub.f32 %v251_v16, %v314_v39  ;;  %3672 = vmatprep.subr.bf16.mxu0 %v5455_v1  ;;  %v1185_v3 = vand.u32 4294901760, %v286_v40  ;;  %v1188_v4 = vand.u32 4294901760, %v287_v41  ;;  %v289_v16 = vld [vmem:[#allocation5 + $0x168] sm:$0xff] }
  0x65   : > { %5665 = vst [vmem:[#allocation30_spill] sm:$0xff] %v4328_v43  ;;  %5666 = vst [vmem:[#allocation31_spill] sm:$0xff] %v4330_v44  ;;  %3409 = vmatprep.subr.bf16.mxu1 %v4324_v36  ;;  %v4344_v2 = vsub.f32 %v268_v22, %v365_v50  ;;  %v317_v6 = vand.u32 4294901760, %v252_v42  ;;  %v4346_v9 = vpack.c.bf16 %v368_v0, %v365_v50  ;;  %v320_v15 = vand.u32 4294901760, %v253_v51  ;;  %v272_v36 = vld [vmem:[#allocation5 + $0xe0] sm:$0xff]  ;;  %v273_v19 = vld [vmem:[#allocation5 + $0xe8] sm:$0xff]  ;;  %p4032_p8 = por %p4031_p7, %p4030_p4 }
  0x66   : > { %5667 = vst [vmem:[#allocation32_spill] sm:$0xff] %v4332_v49  ;;  %5668 = vst [vmem:[#allocation33_spill] sm:$0xff] %v4336_v57  ;;  %v4348_v10 = vsub.f32 %v269_v35, %v368_v0  ;;  %v371_v21 = vand.u32 4294901760, %v270_v56  ;;  %v4350_v38 = vpack.c.bf16 %v1188_v4, %v1185_v3  ;;  %v4352_v39 = vsub.f32 %v286_v40, %v1185_v3 }
  0x67   : > { %5669 = vst [vmem:[#allocation34_spill] sm:$0xff] %v4346_v9  ;;  %v4354_v22 = vsub.f32 %v287_v41, %v1188_v4  ;;  %v4356_v1 = vsub.f32 %v252_v42, %v317_v6  ;;  %3674 = vmatpush3.bf16.msra.mxu0 %v4328_v43  ;;  %v4360_v35 = vpack.c.bf16 %v320_v15, %v317_v6  ;;  %v374_v0 = vand.u32 4294901760, %v271_v7  ;;  %v290_v4 = vld [vmem:[#allocation5 + $0x170] sm:$0xff]  ;;  %p4033_p11 = pnand %p4032_p8, %p4026_p3 }
  0x68   : > { %5670 = vst [vmem:[#allocation35_spill] sm:$0xff] %v4350_v38  ;;  %5671 = vst [vmem:[#allocation36_spill] sm:$0xff] %v4352_v39  ;;  %3411 = vmatpush3.bf16.msra.mxu1 %v4336_v57  ;;  %v4362_v50 = vsub.f32 %v253_v51, %v320_v15  ;;  %v4364_v11 = vsub.f32 %v270_v56, %v371_v21  ;;  %3675 = vmatprep.subr.bf16.mxu0 %v5674_v60  ;;  %v1191_v40 = vand.u32 4294901760, %v288_v8  ;;  %v291_v51 = vld [vmem:[#allocation5 + $0x178] sm:$0xff]  ;;  %v256_v15 = vld [vmem:[#allocation5 + $0x60] sm:$0xff] }
  0x69   : > { %5672 = vst [vmem:[#allocation37_spill] sm:$0xff] %v4354_v22  ;;  %5673 = vst [vmem:[#allocation38_spill] sm:$0xff] %v4360_v35  ;;  %3413 = vmatprep.subr.bf16.mxu1 %v4346_v9  ;;  %v1194_v41 = vand.u32 4294901760, %v289_v16  ;;  %v323_v42 = vand.u32 4294901760, %v254_v29  ;;  %v326_v3 = vand.u32 4294901760, %v255_v30  ;;  %v4368_v48 = vpack.c.bf16 %v374_v0, %v371_v21 }
  0x6a   : > { %v4370_v45 = vsub.f32 %v271_v7, %v374_v0  ;;  %v377_v6 = vand.u32 4294901760, %v272_v36  ;;  %v380_v57 = vand.u32 4294901760, %v273_v19  ;;  %v4374_v56 = vsub.f32 %v288_v8, %v1191_v40 }
  0x6b   : > { %5675 = vst [vmem:[#allocation39_spill] sm:$0xff] %v4368_v48  ;;  %v4372_v26 = vpack.c.bf16 %v1194_v41, %v1191_v40  ;;  %v4376_v43 = vsub.f32 %v289_v16, %v1194_v41  ;;  %v4378_v9 = vpack.c.bf16 %v326_v3, %v323_v42  ;;  %3677 = vmatpush3.bf16.msra.mxu0 %v4350_v38  ;;  %v1197_v32 = vand.u32 4294901760, %v290_v4 }
  0x6c   : > { %5677 = vst [vmem:[#allocation41_spill] sm:$0xff] %v4374_v56  ;;  %3415 = vmatpush3.bf16.msra.mxu1 %v4360_v35  ;;  %v4382_v7 = vsub.f32 %v254_v29, %v323_v42  ;;  %v4384_v21 = vsub.f32 %v255_v30, %v326_v3  ;;  %v4386_v0 = vpack.c.bf16 %v380_v57, %v377_v6  ;;  %v1200_v40 = vand.u32 4294901760, %v291_v51  ;;  %v258_v30 = vld [vmem:[#allocation5 + $0x70] sm:$0xff] }
  0x6d   : > { %5676 = vst [vmem:[#allocation40_spill] sm:$0xff] %v4372_v26  ;;  %5678 = vst [vmem:[#allocation42_spill] sm:$0xff] %v4376_v43  ;;  %3678 = vmatprep.subr.bf16.mxu0 %v5674_v60  ;;  %3417 = vmatprep.subr.bf16.mxu1 %v4368_v48  ;;  %v4390_v8 = vsub.f32 %v272_v36, %v377_v6  ;;  %v4392_v16 = vsub.f32 %v273_v19, %v380_v57  ;;  %v329_v41 = vand.u32 4294901760, %v256_v15  ;;  %v5491_v56 = vmov 0.0   ;;  %v259_v36 = vld [vmem:[#allocation5 + $0x78] sm:$0xff] }
  0x6e   : > { %5679 = vst [vmem:[#allocation43_spill] sm:$0xff] %v4378_v9  ;;  %5680 = vst [vmem:[#allocation44_spill] sm:$0xff] %v4386_v0  ;;  %v4394_v38 = vsub.f32 %v290_v4, %v1197_v32  ;;  %v332_v29 = vand.u32 4294901760, %v257_v13  ;;  %v383_v42 = vand.u32 4294901760, %v274_v54  ;;  %v4396_v3 = vpack.c.bf16 %v1200_v40, %v1197_v32  ;;  %3113 = vmatprep.mubr.msk.f32.mxu0 %vm4101_vm0, %v5491_v56 }
  0x6f   : > { %v4398_v35 = vsub.f32 %v291_v51, %v1200_v40  ;;  %v4400_v43 = vsub.f32 %v256_v15, %v329_v41  ;;  %v386_v19 = vand.u32 4294901760, %v275_v24  ;;  %3680 = vmatpush3.bf16.msra.mxu0 %v4372_v26  ;;  %v335_v15 = vand.u32 4294901760, %v258_v30 }
  0x70   : > { %5681 = vst [vmem:[#allocation45_spill] sm:$0xff] %v4394_v38  ;;  %5682 = vst [vmem:[#allocation46_spill] sm:$0xff] %v4396_v3  ;;  %3419 = vmatpush3.bf16.msra.mxu1 %v4378_v9  ;;  %v4406_v57 = vpack.c.bf16 %v332_v29, %v329_v41  ;;  %v4408_v4 = vsub.f32 %v257_v13, %v332_v29  ;;  %v4410_v32 = vsub.f32 %v274_v54, %v383_v42 }
  0x71   : > { %5683 = vst [vmem:[#allocation47_spill] sm:$0xff] %v4398_v35  ;;  %5684 = vst [vmem:[#allocation48_spill] sm:$0xff] %v4400_v43  ;;  %3681 = vmatprep.subr.bf16.mxu0 %v5674_v60  ;;  %3421 = vmatprep.subr.bf16.mxu1 %v4386_v0  ;;  %v4414_v6 = vpack.c.bf16 %v386_v19, %v383_v42  ;;  %v4416_v51 = vsub.f32 %v275_v24, %v386_v19  ;;  %v338_v40 = vand.u32 4294901760, %v259_v36 }
  0x72   : > { %5685 = vst [vmem:[#allocation49_spill] sm:$0xff] %v4406_v57  ;;  %5686 = vst [vmem:[#allocation50_spill] sm:$0xff] %v4408_v4  ;;  %v5495_v56 = vand.u32 4294901760, %v4259_v27  ;;  %v5502_v9 = vand.u32 4294901760, %v4261_v31  ;;  %v4420_v41 = vsub.f32 %v258_v30, %v335_v15  ;;  %v5503_v13 = vand.u32 4294901760, %v4274_v46 }
  0x73   : > { %5687 = vst [vmem:[#allocation51_spill] sm:$0xff] %v4410_v32  ;;  %5688 = vst [vmem:[#allocation52_spill] sm:$0xff] %v4414_v6  ;;  %3683 = vmatpush3.bf16.msra.mxu0 %v4396_v3  ;;  %v4425_v54 = vpack.c.bf16 %v338_v40, %v335_v15  ;;  %v4427_v29 = vsub.f32 %v259_v36, %v338_v40  ;;  %v5504_v42 = vand.u32 4294901760, %v4276_v47  ;;  %v5512_v40 = vand.u32 4294901760, %v4280_v52 }
  0x74   : > { %5689 = vst [vmem:[#allocation53_spill] sm:$0xff] %v4416_v51  ;;  %5690 = vst [vmem:[#allocation54_spill] sm:$0xff] %v4420_v41  ;;  %3423 = vmatpush3.bf16.msra.mxu1 %v4406_v57  ;;  %v520_v24 = vsub.f32 %v4259_v27, %v5495_v56  ;;  %3684 = vmatprep.subr.bf16.mxu0 %v5674_v60  ;;  %v527_v30 = vsub.f32 %v4261_v31, %v5502_v9  ;;  %v5511_v56 = vand.u32 4294901760, %v4282_v53 }
  0x75   : > { %5691 = vst [vmem:[#allocation55_spill] sm:$0xff] %v4425_v54  ;;  %5692 = vst [vmem:[#allocation56_spill] sm:$0xff] %v4427_v29  ;;  %3425 = vmatprep.subr.bf16.mxu1 %v4414_v6  ;;  %v408_v19 = vsub.f32 %v4274_v46, %v5503_v13  ;;  %v415_v15 = vsub.f32 %v4276_v47, %v5504_v42  ;;  %v534_v9 = vsub.f32 %v4280_v52, %v5512_v40 }
  0x76   : > { %v521_v36 = vand.u32 4294901760, %v520_v24  ;;  %v528_v57 = vand.u32 4294901760, %v527_v30  ;;  %v541_v24 = vsub.f32 %v4282_v53, %v5511_v56  ;;  %v5513_v13 = vand.u32 4294901760, %v4294_v61 }
  0x77   : > { %v409_v0 = vand.u32 4294901760, %v408_v19  ;;  %v416_v6 = vand.u32 4294901760, %v415_v15  ;;  %v5514_v48 = vand.u32 4294901760, %v4298_v63  ;;  %v5515_v3 = vand.u32 4294901760, %v4300_v5 }
  0x78   : > { %3427 = vmatpush3.bf16.msra.mxu1 %v4425_v54  ;;  %v3428_v42 = vpack.c.bf16 %v528_v57, %v521_v36  ;;  %v535_v19 = vand.u32 4294901760, %v534_v9  ;;  %v542_v54 = vand.u32 4294901760, %v541_v24  ;;  %v422_v15 = vsub.f32 %v4294_v61, %v5513_v13 }
  0x79   : > { %v4456_v30 = vpack.c.bf16 %v416_v6, %v409_v0  ;;  %v429_v56 = vsub.f32 %v4298_v63, %v5514_v48  ;;  %v548_v57 = vsub.f32 %v4300_v5, %v5515_v3  ;;  %v5516_v36 = vand.u32 4294901760, %v4304_v12 }
  0x7a   : > { %3429 = vmatprep.subr.bf16.mxu1 %v3428_v42  ;;  %v4468_v40 = vpack.c.bf16 %v542_v54, %v535_v19  ;;  %v423_v0 = vand.u32 4294901760, %v422_v15  ;;  %v5517_v9 = vand.u32 4294901760, %v4316_v20  ;;  %v5522_v13 = vand.u32 4294901760, %v4320_v23 }
  0x7b   : > { %v430_v6 = vand.u32 4294901760, %v429_v56  ;;  %v549_v24 = vand.u32 4294901760, %v548_v57  ;;  %v555_v42 = vsub.f32 %v4304_v12, %v5516_v36  ;;  %v5523_v3 = vand.u32 4294901760, %v4322_v28 }
  0x7c   : > { %v436_v48 = vsub.f32 %v4316_v20, %v5517_v9  ;;  %v5524_v54 = vand.u32 4294901760, %v4326_v37  ;;  %v443_v56 = vsub.f32 %v4320_v23, %v5522_v13  ;;  %v5529_v13 = vand.u32 4294901760, %v4344_v2 }
  0x7d   : > { %v4480_v19 = vpack.c.bf16 %v430_v6, %v423_v0  ;;  %v556_v15 = vand.u32 4294901760, %v555_v42  ;;  %v562_v36 = vsub.f32 %v4322_v28, %v5523_v3  ;;  %v5525_v0 = vand.u32 4294901760, %v4338_v58 }
  0x7e   : > { %v437_v57 = vand.u32 4294901760, %v436_v48  ;;  %v569_v9 = vsub.f32 %v4326_v37, %v5524_v54  ;;  %v444_v35 = vand.u32 4294901760, %v443_v56  ;;  %v5526_v6 = vand.u32 4294901760, %v4340_v62 }
  0x7f   : > { %v4491_v26 = vpack.c.bf16 %v556_v15, %v549_v24  ;;  %v563_v42 = vand.u32 4294901760, %v562_v36  ;;  %v450_v3 = vsub.f32 %v4338_v58, %v5525_v0  ;;  %v5528_v15 = vand.u32 4294901760, %v4348_v10 }
  0x80   : > { %v570_v38 = vand.u32 4294901760, %v569_v9  ;;  %v4496_v48 = vpack.c.bf16 %v444_v35, %v437_v57  ;;  %v457_v24 = vsub.f32 %v4340_v62, %v5526_v6  ;;  %v576_v36 = vsub.f32 %v4344_v2, %v5529_v13 }
  0x81   : > { %v451_v9 = vand.u32 4294901760, %v450_v3  ;;  %v583_v35 = vsub.f32 %v4348_v10, %v5528_v15  ;;  %v5530_v57 = vand.u32 4294901760, %v4356_v1  ;;  %v5532_v6 = vand.u32 4294901760, %v4364_v11 }
  0x82   : > { %5693 = vst [vmem:[#allocation57_spill] sm:$0xff] %v4496_v48  ;;  %v4505_v56 = vpack.c.bf16 %v570_v38, %v563_v42  ;;  %v458_v54 = vand.u32 4294901760, %v457_v24  ;;  %v577_v0 = vand.u32 4294901760, %v576_v36  ;;  %v5531_v48 = vand.u32 4294901760, %v4362_v50 }
  0x83   : > { %v584_v38 = vand.u32 4294901760, %v583_v35  ;;  %v464_v42 = vsub.f32 %v4356_v1, %v5530_v57  ;;  %v5533_v3 = vand.u32 4294901760, %v4370_v45  ;;  %v590_v36 = vsub.f32 %v4364_v11, %v5532_v6 }
  0x84   : > { %5694 = vst [vmem:[#allocation58_spill] sm:$0xff] %v4505_v56  ;;  %v4516_v22 = vpack.c.bf16 %v458_v54, %v451_v9  ;;  %v471_v24 = vsub.f32 %v4362_v50, %v5531_v48  ;;  %v5534_v9 = vand.u32 4294901760, %v4382_v7  ;;  %v5537_v6 = vand.u32 4294901760, %v4390_v8 }
  0x85   : > { %v4528_v15 = vpack.c.bf16 %v584_v38, %v577_v0  ;;  %v465_v13 = vand.u32 4294901760, %v464_v42  ;;  %v597_v54 = vsub.f32 %v4370_v45, %v5533_v3  ;;  %v591_v57 = vand.u32 4294901760, %v590_v36 }
  0x86   : > { %5695 = vst [vmem:[#allocation59_spill] sm:$0xff] %v4516_v22  ;;  %v472_v35 = vand.u32 4294901760, %v471_v24  ;;  %v5535_v22 = vand.u32 4294901760, %v4384_v21  ;;  %v478_v48 = vsub.f32 %v4382_v7, %v5534_v9  ;;  %v5536_v0 = vand.u32 4294901760, %v4392_v16 }
  0x87   : > { %5696 = vst [vmem:[#allocation60_spill] sm:$0xff] %v4528_v15  ;;  %v598_v56 = vand.u32 4294901760, %v597_v54  ;;  %v604_v36 = vsub.f32 %v4390_v8, %v5537_v6  ;;  %v5538_v15 = vand.u32 4294901760, %v4400_v43 }
  0x88   : > { %v4540_v38 = vpack.c.bf16 %v472_v35, %v465_v13  ;;  %v485_v42 = vsub.f32 %v4384_v21, %v5535_v22  ;;  %v479_v24 = vand.u32 4294901760, %v478_v48  ;;  %v611_v54 = vsub.f32 %v4392_v16, %v5536_v0 }
  0x89   : > { %v4545_v3 = vpack.c.bf16 %v598_v56, %v591_v57  ;;  %v5539_v13 = vand.u32 4294901760, %v4408_v4  ;;  %v605_v35 = vand.u32 4294901760, %v604_v36  ;;  %v5540_v22 = vand.u32 4294901760, %v4410_v32 }
  0x8a   : > { %5697 = vst [vmem:[#allocation61_spill] sm:$0xff] %v4540_v38  ;;  %v486_v9 = vand.u32 4294901760, %v485_v42  ;;  %v612_v38 = vand.u32 4294901760, %v611_v54  ;;  %v5541_v56 = vand.u32 4294901760, %v4416_v51  ;;  %v492_v57 = vsub.f32 %v4400_v43, %v5538_v15 }
  0x8b   : > { %5698 = vst [vmem:[#allocation62_spill] sm:$0xff] %v4545_v3  ;;  %v499_v42 = vsub.f32 %v4408_v4, %v5539_v13  ;;  %v5542_v0 = vand.u32 4294901760, %v4420_v41  ;;  %v618_v36 = vsub.f32 %v4410_v32, %v5540_v22  ;;  %v5560_v32 = vand.u32 4294901760, %v4267_v34  ;;  %v4828_v34 = vld [vmem:[#allocation2 + $0x30] sm:$0xff] }
  0x8c   : > { %v4557_v48 = vpack.c.bf16 %v486_v9, %v479_v24  ;;  %v4566_v6 = vpack.c.bf16 %v612_v38, %v605_v35  ;;  %v625_v9 = vsub.f32 %v4416_v51, %v5541_v56  ;;  %v5543_v24 = vand.u32 4294901760, %v4427_v29 }
  0x8d   : > { %v493_v54 = vand.u32 4294901760, %v492_v57  ;;  %v500_v15 = vand.u32 4294901760, %v499_v42  ;;  %v506_v13 = vsub.f32 %v4420_v41, %v5542_v0  ;;  %v619_v35 = vand.u32 4294901760, %v618_v36 }
  0x8e   : > { %5699 = vst [vmem:[#allocation63_spill] sm:$0xff] %v4557_v48  ;;  %5700 = vst [vmem:[#allocation64_spill] sm:$0xff] %v4566_v6  ;;  %v626_v6 = vand.u32 4294901760, %v625_v9  ;;  %v513_v22 = vsub.f32 %v4427_v29, %v5543_v24  ;;  %v5561_v29 = vand.u32 4294901760, %v4265_v33  ;;  %v4830_v33 = vld [vmem:[#allocation2 + $0x38] sm:$0xff] }
  0x8f   : > { %v4585_v48 = vpack.c.bf16 %v500_v15, %v493_v54  ;;  %v507_v57 = vand.u32 4294901760, %v506_v13  ;;  %v5555_v15 = vand.u32 4294901760, %v4251_v18  ;;  %v5554_v13 = vand.u32 4294901760, %v4255_v25 }
  0x90   : > { %v4591_v3 = vpack.c.bf16 %v626_v6, %v619_v35  ;;  %v514_v36 = vand.u32 4294901760, %v513_v22  ;;  %v5567_v25 = vand.u32 4294901760, %v4290_v59  ;;  %v5743_v59 = vld [vmem:[#allocation53_spill] sm:$0xff] }
  0x91   : > { %v3685_v41 = vpack.c.bf16 %v5554_v13, %v5555_v15  ;;  %v3688_v13 = vpack.c.bf16 %v5560_v32, %v5561_v29  ;;  %v5568_v15 = vand.u32 4294901760, %v4286_v55  ;;  %v5564_v32 = vand.u32 4294901760, %v4308_v14  ;;  %v4814_v14 = vld [vmem:[#allocation2 + $0x28] sm:$0xff]  ;;  %v5744_v55 = vld [vmem:[#allocation51_spill] sm:$0xff] }
  0x92   : > { %v4605_v35 = vpack.c.bf16 %v514_v36, %v507_v57  ;;  %v201_v57 = vlaneseq  ;;  %v5563_v29 = vand.u32 4294901760, %v4312_v17 }
  0x94   : > { %v4619_v36 = vand.u32 127, %v201_v57  ;;  %v5703_v57 = vmov 0.0  }
  0x96   : > { %5701 = vst [vmem:[#allocation65_spill] sm:$0xff] %v4619_v36  ;;  %v4622_v22 = vadd.s32 128, %v4619_v36  ;;  %v4625_v24 = vadd.s32 256, %v4619_v36 }
  0x98   : > { %5702 = vst [vmem:[#allocation66_spill] sm:$0xff] %v4625_v24 }
  0xd8   : > { %v4627_v9 = vpop.permute.xlu0 %217 }
  0xd9   : > { %vm219_vm1 = vcmp.eq.s32.totalorder %v4619_v36, %v4627_v9  ;;  %vm220_vm2 = vcmp.eq.s32.totalorder %v4622_v22, %v4627_v9  ;;  %vm221_vm3 = vcmp.eq.s32.totalorder %v4625_v24, %v4627_v9  ;;  %v5750_v24 = vld [vmem:[#allocation14_spill] sm:$0xff]  ;;  %v5856_v22 = vld [vmem:[#allocation28_spill] sm:$0xff] }
  0xda   : > { %v2543_v6 = vsel %vm219_vm1, 1.0, %v5703_v57  ;;  %v2545_v54 = vsel %vm221_vm3, 1.0, %v5703_v57  ;;  %v2544_v0 = vsel %vm220_vm2, 1.0, %v5703_v57 }
  0xdb   : > { %v4649_v42 = vsub.f32 %v2543_v6, %v2543_v6  ;;  %v4651_v56 = vsub.f32 %v2545_v54, %v2545_v54  ;;  %v4653_v38 = vsub.f32 %v2544_v0, %v2544_v0 }
  0xdd   : > { %5704 = vst [vmem:[#allocation67_spill] sm:$0xff] %v4651_v56  ;;  %v5558_v51 = vand.u32 4294901760, %v4651_v56  ;;  %v5559_v43 = vand.u32 4294901760, %v4653_v38  ;;  %v5562_v6 = vand.u32 4294901760, %v4649_v42  ;;  %v5745_v56 = vpack.c.bf16 %v5743_v59, %v5744_v55  ;;  %v4891_v59 = vld [vmem:[#allocation2 + $0x68] sm:$0xff] }
  0xdf   : > { %3114 = vmatmul.mubr.f32.vlgmr.msra.gmra.mrb[0].mxu0 %v5558_v51  ;;  %v391_v0 = vsub.f32 %v4653_v38, %v5559_v43  ;;  %v397_v54 = vsub.f32 %v4649_v42, %v5562_v6  ;;  %v5571_v6 = vmov 1.0  }
  0xe0   : > { %3686 = vmatpush3.bf16.msra.mxu0 %v3685_v41  ;;  %3148 = vmatprep.mubr.msk.f32.mxu0 %vm4101_vm0, %v5703_v57  ;;  %v3691_v41 = vpack.c.bf16 %v5567_v25, %v5568_v15  ;;  %v5711_v25 = vld [vmem:[#allocation60_spill] sm:$0xff]  ;;  %v5713_v15 = vld [vmem:[#allocation47_spill] sm:$0xff] }
  0xe1   : > { %3687 = vmatprep.subr.bf16.mxu0 %v5674_v60  ;;  %v392_v51 = vand.u32 4294901760, %v391_v0  ;;  %v398_v43 = vand.u32 4294901760, %v397_v54  ;;  %v5705_v0 = vld [vmem:[#allocation37_spill] sm:$0xff] }
  0xe2   : > { %v5569_v54 = vand.u32 4294901760, %v5705_v0  ;;  %v5739_v0 = vld [vmem:[#allocation46_spill] sm:$0xff] }
  0xe3   : > { %393 = vmatprep.mubr.f32.mxu1 %v392_v51  ;;  %v5566_v51 = vand.u32 4294901760, %v4330_v44  ;;  %v5741_v44 = vld [vmem:[#allocation48_spill] sm:$0xff] }
  0xe4   : > { %3689 = vmatpush3.bf16.msra.mxu0 %v3688_v13  ;;  %399 = vmatmul.mubr.f32.vlgmr.msra.gmra.mrb[0].mxu1 %v398_v43  ;;  %v3694_v43 = vpack.c.bf16 %v5563_v29, %v5564_v32  ;;  %v5570_v13 = vand.u32 4294901760, %v4352_v39  ;;  %v5707_v29 = vld [vmem:[#allocation58_spill] sm:$0xff]  ;;  %v5742_v17 = vpack.c.bf16 %v4408_v4, %v5741_v44 }
  0xe5   : > { %3431 = vmatpush3.bf16.msra.mxu1 %v4456_v30  ;;  %2546 = vmatprep.mubr.msk.f32.mxu1 %vm220_vm2, %v5571_v6  ;;  %v5565_v30 = vand.u32 4294901760, %v4332_v49  ;;  %v5709_v32 = vld [vmem:[#allocation42_spill] sm:$0xff] }
  0xe6   : > { %3690 = vmatprep.subr.bf16.mxu0 %v5674_v60  ;;  %3433 = vmatprep.subr.bf16.mxu1 %v4468_v40  ;;  %v5715_v6 = vld [vmem:[#allocation62_spill] sm:$0xff] }
  0xe7   : > { %v3697_v40 = vpack.c.bf16 %v5565_v30, %v5566_v51  ;;  %v5575_v30 = vand.u32 4294901760, %v5709_v32  ;;  %v5710_v51 = vld [vmem:[#allocation59_spill] sm:$0xff] }
  0xe8   : > { %3692 = vmatpush3.bf16.msra.mxu0 %v3691_v41  ;;  %v5706_v41 = vld [vmem:[#allocation57_spill] sm:$0xff]  ;;  %v230_v32 = vld [vmem:[#allocation2 + $0x10] sm:$0xff] }
  0xe9   : > { %3435 = vmatpush3.bf16.msra.mxu1 %v4480_v19  ;;  %3693 = vmatprep.subr.bf16.mxu0 %v5674_v60  ;;  %v5708_v19 = vld [vmem:[#allocation41_spill] sm:$0xff] }
  0xea   : > { %3437 = vmatprep.subr.bf16.mxu1 %v4491_v26  ;;  %v3700_v26 = vpack.c.bf16 %v5569_v54, %v5570_v13  ;;  %v5573_v54 = vand.u32 4294901760, %v5713_v15  ;;  %v5714_v13 = vld [vmem:[#allocation61_spill] sm:$0xff] }
  0xec   : > { %3695 = vmatpush3.bf16.msra.mxu0 %v3694_v43  ;;  %v5576_v43 = vand.u32 4294901760, %v5708_v19  ;;  %v5738_v19 = vpack.c.bf16 %v4392_v16, %v4390_v8 }
  0xed   : > { %3439 = vmatpush3.bf16.msra.mxu1 %v5706_v41  ;;  %3696 = vmatprep.subr.bf16.mxu0 %v5674_v60 }
  0xee   : > { %3441 = vmatprep.subr.bf16.mxu1 %v5707_v29  ;;  %v3703_v29 = vpack.c.bf16 %v5575_v30, %v5576_v43  ;;  %v229_v30 = vld [vmem:[#allocation2 + $0x8] sm:$0xff]  ;;  %v5735_v43 = vpack.c.bf16 %v4370_v45, %v4364_v11 }
  0xf0   : > { %3698 = vmatpush3.bf16.msra.mxu0 %v3697_v40  ;;  %v5712_v40 = vld [vmem:[#allocation45_spill] sm:$0xff] }
  0xf1   : > { %3443 = vmatpush3.bf16.msra.mxu1 %v5710_v51  ;;  %3699 = vmatprep.subr.bf16.mxu0 %v5674_v60  ;;  %v5574_v41 = vand.u32 4294901760, %v5712_v40  ;;  %v5716_v51 = vld [vmem:[#allocation63_spill] sm:$0xff]  ;;  %v1799_v40 = vand.u32 4294901760, %v229_v30 }
  0xf2   : > { %3445 = vmatprep.subr.bf16.mxu1 %v5711_v25 }
  0xf3   : > { %v3706_v25 = vpack.c.bf16 %v5573_v54, %v5574_v41  ;;  %v5730_v54 = vld [vmem:[#allocation30_spill] sm:$0xff]  ;;  %v5733_v41 = vld [vmem:[#allocation35_spill] sm:$0xff] }
  0xf4   : > { %3701 = vmatpush3.bf16.msra.mxu0 %v3700_v26  ;;  %v5717_v26 = vld [vmem:[#allocation64_spill] sm:$0xff] }
  0xf5   : > { %3447 = vmatpush3.bf16.msra.mxu1 %v5714_v13  ;;  %3702 = vmatprep.subr.bf16.mxu0 %v5674_v60  ;;  %v5719_v13 = vld [vmem:[#allocation12_spill] sm:$0xff] }
  0xf6   : > { %3449 = vmatprep.subr.bf16.mxu1 %v5715_v6  ;;  %v5718_v6 = vmov 1.0  }
  0xf8   : > { %3704 = vmatpush3.bf16.msra.mxu0 %v3703_v29  ;;  %v5722_v29 = vpack.c.bf16 %v4276_v47, %v4274_v46 }
  0xf9   : > { %3451 = vmatpush3.bf16.msra.mxu1 %v5716_v51  ;;  %3705 = vmatprep.subr.bf16.mxu0 %v5674_v60  ;;  %v5725_v51 = vpack.c.bf16 %v4298_v63, %v4294_v61 }
  0xfa   : > { %3453 = vmatprep.subr.bf16.mxu1 %v5717_v26  ;;  %v5726_v26 = vpack.c.bf16 %v4304_v12, %v4300_v5 }
  0xfc   : > { %3707 = vmatpush3.bf16.msra.mxu0 %v3706_v25  ;;  %v5724_v25 = vld [vmem:[#allocation20_spill] sm:$0xff] }
  0xfd   : > { %3455 = vmatpush3.bf16.msra.mxu1 %v4585_v48  ;;  %3708 = vmatprep.subr.bf16.mxu0 %v5674_v60  ;;  %v5720_v48 = vpack.c.bf16 %v4261_v31, %v4259_v27 }
  0xfe   : > { %3457 = vmatprep.subr.bf16.mxu1 %v4591_v3  ;;  %v5721_v3 = vld [vmem:[#allocation15_spill] sm:$0xff] }
  0xff   : > { %3149 = vmatmul.mubr.msk.f32.vlgmr.msra.gmra.mrb[0].mxu0 %vm221_vm3, %v5718_v6 }
 0x100   : > { %3710 = vmatpush3.bf16.msra.mxu0 %v5719_v13  ;;  %3183 = vmatprep.mubr.msk.f32.mxu0 %vm4101_vm0, %v5703_v57  ;;  %v5752_v13 = vld [vmem:[#allocation18_spill] sm:$0xff] }
 0x101   : > { %3459 = vmatpush3.bf16.msra.mxu1 %v4605_v35  ;;  %3711 = vmatprep.subr.bf16.mxu0 %v5674_v60  ;;  %v5723_v35 = vpack.c.bf16 %v4282_v53, %v4280_v52 }
 0x102   : > { %3461 = vmatprep.subr.bf16.mxu1 %v5720_v48  ;;  %v5727_v48 = vld [vmem:[#allocation25_spill] sm:$0xff] }
 0x104   : > { %2547 = vmatmul.mubr.msk.f32.vlgmr.msra.gmra.mrb[2].mxu1 %vm219_vm1, %v5718_v6  ;;  %3713 = vmatpush3.bf16.msra.mxu0 %v5721_v3  ;;  %v207_v3 = vpop.permute.xlu0 %206 }
 0x105   : > { %3463 = vmatpush3.bf16.msra.mxu1 %v5722_v29  ;;  %766 = vmatprep.mubr.f32.mxu1 %v4653_v38  ;;  %v5728_v29 = vpack.c.bf16 %v4320_v23, %v4316_v20  ;;  %vm208_vm5 = vcmp.eq.s32.totalorder %v4619_v36, %v207_v3 }
 0x106   : > { %3714 = vmatprep.subr.bf16.mxu0 %v5674_v60  ;;  %3465 = vmatprep.subr.bf16.mxu1 %v5723_v35  ;;  %v5729_v35 = vpack.c.bf16 %v4326_v37, %v4322_v28 }
 0x108   : > { %3716 = vmatpush3.bf16.msra.mxu0 %v5724_v25  ;;  %v211_v25 = vpop.permute.xlu1 %210 }
 0x109   : > { %3467 = vmatpush3.bf16.msra.mxu1 %v5725_v51  ;;  %3717 = vmatprep.subr.bf16.mxu0 %v5674_v60  ;;  %v5731_v51 = vpack.c.bf16 %v4340_v62, %v4338_v58  ;;  %vm212_vm4 = vcmp.eq.s32.totalorder %v4619_v36, %v211_v25  ;;  %v5760_v25 = vmov 0  ;;  %v5775_v36 = vld [vmem:[#allocation34_spill] sm:$0xff] }
 0x10a   : > { %3469 = vmatprep.subr.bf16.mxu1 %v5726_v26  ;;  %v5732_v26 = vpack.c.bf16 %v4348_v10, %v4344_v2  ;;  %vm4874_vm6 = vmor %vm208_vm5, %vm212_vm4 }
 0x10b   : > { %v5761_v25 = vsel %vm4874_vm6, 4294967295, %v5760_v25 }
 0x10c   : > { %3719 = vmatpush3.bf16.msra.mxu0 %v5727_v48  ;;  %5762 = vst [vmem:[#allocation61_spill] sm:$0xff] %v5761_v25  ;;  %v5782_v25 = vld [vmem:[#allocation38_spill] sm:$0xff] }
 0x10d   : > { %3471 = vmatpush3.bf16.msra.mxu1 %v5728_v29  ;;  %3720 = vmatprep.subr.bf16.mxu0 %v5674_v60  ;;  %v5734_v29 = vpack.c.bf16 %v4362_v50, %v4356_v1 }
 0x10e   : > { %3473 = vmatprep.subr.bf16.mxu1 %v5729_v35  ;;  %v228_v35 = vld [vmem:[#allocation2] sm:$0xff] }
 0x10f   : > { %v1796_v15 = vand.u32 4294901760, %v228_v35 }
 0x110   : > { %3722 = vmatpush3.bf16.msra.mxu0 %v5730_v54  ;;  %v5754_v54 = vld [vmem:[#allocation19_spill] sm:$0xff] }
 0x111   : > { %3475 = vmatpush3.bf16.msra.mxu1 %v5731_v51  ;;  %3723 = vmatprep.subr.bf16.mxu0 %v5674_v60  ;;  %v5736_v51 = vld [vmem:[#allocation40_spill] sm:$0xff]  ;;  %v4806_v39 = vpack.c.bf16 %v1799_v40, %v1796_v15  ;;  %v4878_v3 = vsub.f32 %v228_v35, %v1796_v15  ;;  %v2542_v15 = vsel %vm4874_vm6, 1.0, %v5703_v57 }
 0x112   : > { %3477 = vmatprep.subr.bf16.mxu1 %v5732_v26  ;;  %v5737_v26 = vpack.c.bf16 %v4384_v21, %v4382_v7 }
 0x113   : > { %5740 = vst [vmem:[#allocation57_spill] sm:$0xff] %v4806_v39  ;;  %5763 = vst [vmem:[#allocation62_spill] sm:$0xff] %v4878_v3 }
 0x114   : > { %3725 = vmatpush3.bf16.msra.mxu0 %v5733_v41  ;;  %v4852_v41 = vld [vmem:[#allocation2 + $0x48] sm:$0xff] }
 0x115   : > { %3479 = vmatpush3.bf16.msra.mxu1 %v5734_v29  ;;  %3726 = vmatprep.subr.bf16.mxu0 %v5674_v60  ;;  %v231_v29 = vld [vmem:[#allocation2 + $0x18] sm:$0xff] }
 0x116   : > { %3481 = vmatprep.subr.bf16.mxu1 %v5735_v43  ;;  %v1802_v43 = vand.u32 4294901760, %v230_v32  ;;  %v1805_v49 = vand.u32 4294901760, %v231_v29 }
 0x118   : > { %3728 = vmatpush3.bf16.msra.mxu0 %v5736_v51  ;;  %v5748_v51 = vld [vmem:[#allocation54_spill] sm:$0xff]  ;;  %v4899_v35 = vsub.f32 %v231_v29, %v1805_v49  ;;  %v4916_v29 = vld [vmem:[#allocation2 + $0x70] sm:$0xff] }
 0x119   : > { %3483 = vmatpush3.bf16.msra.mxu1 %v5737_v26  ;;  %3729 = vmatprep.subr.bf16.mxu0 %v5674_v60  ;;  %v4812_v26 = vld [vmem:[#allocation2 + $0x20] sm:$0xff] }
 0x11a   : > { %3485 = vmatprep.subr.bf16.mxu1 %v5738_v19  ;;  %v4824_v19 = vpack.c.bf16 %v1805_v49, %v1802_v43  ;;  %5769 = vst [vmem:[#allocation68_spill] sm:$0xff] %v4899_v35  ;;  %v5774_v49 = vld [vmem:[#allocation33_spill] sm:$0xff] }
 0x11c   : > { %3731 = vmatpush3.bf16.msra.mxu0 %v5739_v0  ;;  %5746 = vst [vmem:[#allocation58_spill] sm:$0xff] %v4824_v19  ;;  %v5609_v0 = vand.u32 4294901760, %v4814_v14 }
 0x11d   : > { %3487 = vmatpush3.bf16.msra.mxu1 %v5742_v17  ;;  %3732 = vmatprep.subr.bf16.mxu0 %v5674_v60  ;;  %v1808_v17 = vand.u32 4294901760, %v4812_v26 }
 0x11e   : > { %3489 = vmatprep.subr.bf16.mxu1 %v5745_v56  ;;  %v5747_v56 = vld [vmem:[#allocation56_spill] sm:$0xff] }
 0x11f   : > { %3184 = vmatmul.mubr.msk.f32.vlgmr.msra.gmra.mrb[0].mxu0 %vm221_vm3, %v5718_v6  ;;  %v5749_v18 = vpack.c.bf16 %v5747_v56, %v5748_v51  ;;  %v4845_v48 = vpack.c.bf16 %v5609_v0, %v1808_v17  ;;  %v5756_v0 = vand.u32 4294901760, %v4830_v33  ;;  %v4871_v56 = vld [vmem:[#allocation2 + $0x58] sm:$0xff] }
 0x120   : > { %3734 = vmatpush3.bf16.msra.mxu0 %v4806_v39  ;;  %3218 = vmatprep.mubr.msk.f32.mxu0 %vm4101_vm0, %v5703_v57  ;;  %v4850_v39 = vld [vmem:[#allocation2 + $0x40] sm:$0xff]  ;;  %v5766_v51 = vld [vmem:[#allocation28_spill] sm:$0xff] }
 0x121   : > { %3491 = vmatpush3.bf16.msra.mxu1 %v5749_v18  ;;  %3735 = vmatprep.subr.bf16.mxu0 %v5674_v60  ;;  %5751 = vst [vmem:[#allocation59_spill] sm:$0xff] %v4845_v48  ;;  %v5753_v18 = vand.u32 4294901760, %v4653_v38  ;;  %v1820_v38 = vand.u32 4294901760, %v4850_v39 }
 0x122   : > { %3493 = vmatprep.subr.bf16.mxu1 %v5750_v24 }
 0x124   : > { %769 = vmatmul.mubr.f32.vlgmr.msra.gmra.mrb[4].mxu1 %v4649_v42  ;;  %3737 = vmatpush3.bf16.msra.mxu0 %v4824_v19  ;;  %v5755_v19 = vand.u32 4294901760, %v4828_v34 }
 0x125   : > { %3495 = vmatpush3.bf16.msra.mxu1 %v5752_v13  ;;  %873 = vmatprep.mubr.f32.mxu1 %v5753_v18  ;;  %v1823_v18 = vand.u32 4294901760, %v4852_v41  ;;  %v5758_v13 = vld [vmem:[#allocation23_spill] sm:$0xff] }
 0x126   : > { %3738 = vmatprep.subr.bf16.mxu0 %v5674_v60  ;;  %3497 = vmatprep.subr.bf16.mxu1 %v5754_v54  ;;  %v4860_v24 = vpack.c.bf16 %v5756_v0, %v5755_v19  ;;  %v4869_v54 = vld [vmem:[#allocation2 + $0x50] sm:$0xff]  ;;  %v5759_v0 = vld [vmem:[#allocation24_spill] sm:$0xff]  ;;  %v4880_v19 = vsub.f32 %v229_v30, %v1799_v40  ;;  %v5767_v30 = vld [vmem:[#allocation29_spill] sm:$0xff]  ;;  %v4897_v40 = vsub.f32 %v230_v32, %v1802_v43 }
 0x127   : > { %v4912_v32 = vsub.f32 %v2542_v15, %v2542_v15  ;;  %v4918_v43 = vld [vmem:[#allocation2 + $0x78] sm:$0xff] }
 0x128   : > { %5757 = vst [vmem:[#allocation60_spill] sm:$0xff] %v4860_v24  ;;  %3740 = vmatpush3.bf16.msra.mxu0 %v4845_v48  ;;  %5764 = vst [vmem:[#allocation63_spill] sm:$0xff] %v4880_v19  ;;  %v4883_v48 = vpack.c.bf16 %v1823_v18, %v1820_v38  ;;  %v5777_v15 = vand.u32 4294901760, %v4880_v19 }
 0x129   : > { %3499 = vmatpush3.bf16.msra.mxu1 %v5758_v13  ;;  %3741 = vmatprep.subr.bf16.mxu0 %v5674_v60  ;;  %5768 = vst [vmem:[#allocation48_spill] sm:$0xff] %v4897_v40  ;;  %5773 = vst [vmem:[#allocation70_spill] sm:$0xff] %v4912_v32  ;;  %v4921_v13 = vsub.f32 %v4812_v26, %v1808_v17  ;;  %v5780_v17 = vand.u32 4294901760, %v4891_v59 }
 0x12a   : > { %3501 = vmatprep.subr.bf16.mxu1 %v5759_v0  ;;  %5765 = vst [vmem:[#allocation64_spill] sm:$0xff] %v4883_v48  ;;  %v4889_v0 = vld [vmem:[#allocation2 + $0x60] sm:$0xff] }
 0x12b   : > { %v5779_v26 = vand.u32 4294901760, %v4889_v0 }
 0x12c   : > { %3743 = vmatpush3.bf16.msra.mxu0 %v4860_v24  ;;  %v5770_v24 = vand.u32 4294901760, %v4869_v54 }
 0x12d   : > { %3503 = vmatpush3.bf16.msra.mxu1 %v5766_v51  ;;  %3744 = vmatprep.subr.bf16.mxu0 %v5674_v60  ;;  %v5771_v51 = vand.u32 4294901760, %v4871_v56 }
 0x12e   : > { %3505 = vmatprep.subr.bf16.mxu1 %v5767_v30  ;;  %v1897_v30 = vsub.f32 %v4880_v19, %v5777_v15  ;;  %v5786_v15 = vand.u32 4294901760, %v4899_v35 }
 0x12f   : > { %v4908_v55 = vpack.c.bf16 %v5771_v51, %v5770_v24  ;;  %v5776_v24 = vand.u32 4294901760, %v4878_v3 }
 0x130   : > { %3746 = vmatpush3.bf16.msra.mxu0 %v4883_v48 }
 0x131   : > { %5772 = vst [vmem:[#allocation69_spill] sm:$0xff] %v4908_v55  ;;  %3507 = vmatpush3.bf16.msra.mxu1 %v5774_v49  ;;  %3747 = vmatprep.subr.bf16.mxu0 %v5674_v60  ;;  %v1890_v51 = vsub.f32 %v4878_v3, %v5776_v24  ;;  %v5778_v49 = vand.u32 4294901760, %v4814_v14  ;;  %v4942_v24 = vpack.c.bf16 %v5780_v17, %v5779_v26  ;;  %v1898_v26 = vand.u32 4294901760, %v1897_v30 }
 0x132   : > { %3509 = vmatprep.subr.bf16.mxu1 %v5775_v36  ;;  %v5785_v17 = vand.u32 4294901760, %v4897_v40  ;;  %v5787_v3 = vand.u32 4294901760, %v4830_v33 }
 0x133   : > { %v4935_v4 = vsub.f32 %v4814_v14, %v5778_v49  ;;  %5781 = vst [vmem:[#allocation71_spill] sm:$0xff] %v4942_v24  ;;  %v5783_v14 = vand.u32 4294901760, %v4828_v34  ;;  %v1891_v19 = vand.u32 4294901760, %v1890_v51  ;;  %v5789_v51 = vand.u32 4294901760, %v4918_v43 }
 0x134   : > { %3749 = vmatpush3.bf16.msra.mxu0 %v4908_v55  ;;  %v5784_v55 = vld [vmem:[#allocation39_spill] sm:$0xff]  ;;  %v1904_v36 = vsub.f32 %v4897_v40, %v5785_v17  ;;  %v4964_v48 = vsub.f32 %v4830_v33, %v5787_v3  ;;  %v4981_v3 = vsub.f32 %v4850_v39, %v1820_v38  ;;  %v5794_v17 = vand.u32 4294901760, %v4921_v13 }
 0x135   : > { %3511 = vmatpush3.bf16.msra.mxu1 %v5782_v25  ;;  %3750 = vmatprep.subr.bf16.mxu0 %v5674_v60  ;;  %v4952_v49 = vsub.f32 %v4828_v34, %v5783_v14  ;;  %v1911_v25 = vsub.f32 %v4899_v35, %v5786_v15  ;;  %v5788_v34 = vand.u32 4294901760, %v4916_v29  ;;  %v5792_v15 = vand.u32 4294901760, %v4912_v32 }
 0x136   : > { %3513 = vmatprep.subr.bf16.mxu1 %v5784_v55  ;;  %v5791_v55 = vld [vmem:[#allocation43_spill] sm:$0xff]  ;;  %v1905_v14 = vand.u32 4294901760, %v1904_v36  ;;  %v5795_v40 = vand.u32 4294901760, %v4935_v4  ;;  %v5797_v36 = vand.u32 4294901760, %v4869_v54  ;;  %v1945_v39 = vand.u32 4294901760, %v4981_v3 }
 0x137   : > { %v4971_v30 = vpack.c.bf16 %v5789_v51, %v5788_v34  ;;  %v1879_v33 = vsub.f32 %v4912_v32, %v5792_v15  ;;  %v4985_v34 = vsub.f32 %v4852_v41, %v1823_v18  ;;  %v3757_v51 = vpack.c.bf16 %v1898_v26, %v1891_v19  ;;  %v5796_v32 = vld [vmem:[#allocation49_spill] sm:$0xff] }
 0x138   : > { %3752 = vmatpush3.bf16.msra.mxu0 %v4942_v24  ;;  %v5793_v24 = vld [vmem:[#allocation44_spill] sm:$0xff]  ;;  %v1912_v35 = vand.u32 4294901760, %v1911_v25  ;;  %v1925_v15 = vsub.f32 %v4935_v4, %v5795_v40  ;;  %v5001_v18 = vsub.f32 %v4869_v54, %v5797_v36  ;;  %v5799_v19 = vand.u32 4294901760, %v4259_v27 }
 0x139   : > { %5790 = vst [vmem:[#allocation72_spill] sm:$0xff] %v4971_v30  ;;  %3515 = vmatpush3.bf16.msra.mxu1 %v5791_v55  ;;  %3753 = vmatprep.subr.bf16.mxu0 %v5674_v60  ;;  %v1918_v55 = vsub.f32 %v4921_v13, %v5794_v17  ;;  %v1880_v41 = vand.u32 4294901760, %v1879_v33  ;;  %v5798_v25 = vld [vmem:[#allocation52_spill] sm:$0xff]  ;;  %v5800_v40 = vand.u32 4294901760, %v4261_v31  ;;  %v5801_v17 = vand.u32 4294901760, %v4871_v56 }
 0x13a   : > { %3517 = vmatprep.subr.bf16.mxu1 %v5793_v24  ;;  %v3760_v33 = vpack.c.bf16 %v1912_v35, %v1905_v14  ;;  %v1926_v36 = vand.u32 4294901760, %v1925_v15  ;;  %v5803_v31 = vand.u32 4294901760, %v4964_v48  ;;  %v5805_v35 = vand.u32 4294901760, %v4274_v46 }
 0x13b   : > { %v3524_v26 = vpack.c.bf16 %v5800_v40, %v5799_v19  ;;  %v5011_v38 = vsub.f32 %v4871_v56, %v5801_v17  ;;  %v1919_v54 = vand.u32 4294901760, %v1918_v55  ;;  %v5804_v56 = vld [vmem:[#allocation55_spill] sm:$0xff]  ;;  %v5806_v55 = vand.u32 4294901760, %v4276_v47 }
 0x13c   : > { %3755 = vmatpush3.bf16.msra.mxu0 %v4971_v30  ;;  %v1952_v30 = vand.u32 4294901760, %v4985_v34  ;;  %v1939_v19 = vsub.f32 %v4964_v48, %v5803_v31  ;;  %v1946_v17 = vsub.f32 %v4981_v3, %v1945_v39  ;;  %v1959_v47 = vand.u32 4294901760, %v5001_v18 }
 0x13d   : > { %3519 = vmatpush3.bf16.msra.mxu1 %v5796_v32  ;;  %3756 = vmatprep.subr.bf16.mxu0 %v5674_v60  ;;  %v3526_v14 = vpack.c.bf16 %v5806_v55, %v5805_v35  ;;  %v1966_v31 = vand.u32 4294901760, %v5011_v38 }
 0x13e   : > { %3521 = vmatprep.subr.bf16.mxu1 %v5798_v25  ;;  %v5802_v25 = vand.u32 4294901760, %v4952_v49  ;;  %v1953_v46 = vsub.f32 %v4985_v34, %v1952_v30  ;;  %v1940_v55 = vand.u32 4294901760, %v1939_v19 }
 0x13f   : > { %3219 = vmatmul.mubr.f32.vlgmr.msra.gmra.mrb[0].mxu0 %v1880_v41  ;;  %v5808_v41 = vand.u32 4294901760, %v4280_v52  ;;  %v5811_v52 = vand.u32 4294901760, %v4649_v42 }
 0x140   : > { %3758 = vmatpush3.bf16.msra.mxu0 %v3757_v51  ;;  %v1932_v27 = vsub.f32 %v4952_v49, %v5802_v25  ;;  %3253 = vmatprep.mubr.msk.f32.mxu0 %vm4101_vm0, %v5703_v57  ;;  %v5807_v51 = vand.u32 4294901760, %v4889_v0  ;;  %v5809_v25 = vand.u32 4294901760, %v4282_v53  ;;  %v3763_v53 = vpack.c.bf16 %v1926_v36, %v1919_v54 }
 0x141   : > { %3523 = vmatpush3.bf16.msra.mxu1 %v5804_v56  ;;  %3759 = vmatprep.subr.bf16.mxu0 %v5674_v60  ;;  %v5816_v54 = vand.u32 4294901760, %v4304_v12  ;;  %v1954_v19 = vand.u32 4294901760, %v1953_v46  ;;  %v5819_v46 = vand.u32 4294901760, %v4320_v23 }
 0x142   : > { %v5032_v15 = vsub.f32 %v4889_v0, %v5807_v51  ;;  %3525 = vmatprep.subr.bf16.mxu1 %v3524_v26  ;;  %v3528_v40 = vpack.c.bf16 %v5809_v25, %v5808_v41  ;;  %v5810_v0 = vand.u32 4294901760, %v4891_v59  ;;  %v1933_v35 = vand.u32 4294901760, %v1932_v27 }
 0x143   : > { %v5812_v51 = vand.u32 4294901760, %v4294_v61  ;;  %v5813_v41 = vand.u32 4294901760, %v4298_v63  ;;  %v1947_v27 = vand.u32 4294901760, %v1946_v17  ;;  %v1960_v61 = vsub.f32 %v5001_v18, %v1959_v47 }
 0x144   : > { %v5049_v26 = vsub.f32 %v4891_v59, %v5810_v0  ;;  %877 = vmatmul.mubr.f32.vlgmr.msra.gmra.mrb[6].mxu1 %v5811_v52  ;;  %3761 = vmatpush3.bf16.msra.mxu0 %v3760_v33  ;;  %v5814_v59 = vand.u32 4294901760, %v4916_v29  ;;  %v5815_v33 = vand.u32 4294901760, %v4300_v5  ;;  %v1967_v63 = vsub.f32 %v5011_v38, %v1966_v31 }
 0x145   : > { %3527 = vmatpush3.bf16.msra.mxu1 %v3526_v14  ;;  %2548 = vmatprep.mubr.msk.f32.mxu1 %vm220_vm2, %v5718_v6  ;;  %v3530_v25 = vpack.c.bf16 %v5813_v41, %v5812_v51  ;;  %v3766_v5 = vpack.c.bf16 %v1940_v55, %v1933_v35  ;;  %v1973_v12 = vand.u32 4294901760, %v5032_v15  ;;  %v5818_v17 = vand.u32 4294901760, %v4316_v20 }
 0x146   : > { %v5064_v42 = vsub.f32 %v4916_v29, %v5814_v59  ;;  %3762 = vmatprep.subr.bf16.mxu0 %v5674_v60  ;;  %3529 = vmatprep.subr.bf16.mxu1 %v3528_v40  ;;  %v3532_v36 = vpack.c.bf16 %v5816_v54, %v5815_v33  ;;  %v5817_v29 = vand.u32 4294901760, %v4918_v43  ;;  %v1980_v40 = vand.u32 4294901760, %v5049_v26 }
 0x147   : > { %v3534_v0 = vpack.c.bf16 %v5819_v46, %v5818_v17  ;;  %v5820_v52 = vand.u32 4294901760, %v4322_v28  ;;  %v1961_v35 = vand.u32 4294901760, %v1960_v61  ;;  %v1968_v55 = vand.u32 4294901760, %v1967_v63 }
 0x148   : > { %v5080_v14 = vsub.f32 %v4918_v43, %v5817_v29  ;;  %3764 = vmatpush3.bf16.msra.mxu0 %v3763_v53  ;;  %v5821_v43 = vand.u32 4294901760, %v4326_v37  ;;  %v3769_v53 = vpack.c.bf16 %v1954_v19, %v1947_v27  ;;  %v1974_v41 = vsub.f32 %v5032_v15, %v1973_v12 }
 0x149   : > { %3531 = vmatpush3.bf16.msra.mxu1 %v3530_v25  ;;  %3765 = vmatprep.subr.bf16.mxu0 %v5674_v60  ;;  %v1981_v20 = vsub.f32 %v5049_v26, %v1980_v40  ;;  %v1987_v23 = vand.u32 4294901760, %v5064_v42  ;;  %v5822_v28 = vand.u32 4294901760, %v4338_v58  ;;  %v5823_v37 = vand.u32 4294901760, %v4340_v62 }
 0x14a   : > { %3533 = vmatprep.subr.bf16.mxu1 %v3532_v36  ;;  %v3536_v51 = vpack.c.bf16 %v5821_v43, %v5820_v52  ;;  %v1994_v25 = vand.u32 4294901760, %v5080_v14  ;;  %v5824_v33 = vand.u32 4294901760, %v4344_v2  ;;  %v5825_v54 = vand.u32 4294901760, %v4348_v10 }
 0x14b   : > { %v3538_v59 = vpack.c.bf16 %v5823_v37, %v5822_v28  ;;  %v3772_v27 = vpack.c.bf16 %v1968_v55, %v1961_v35  ;;  %v1975_v19 = vand.u32 4294901760, %v1974_v41  ;;  %v1982_v61 = vand.u32 4294901760, %v1981_v20  ;;  %v5835_v55 = vld [vmem:[#allocation50_spill] sm:$0xff]  ;;  %v5839_v28 = vld [vmem:[#allocation53_spill] sm:$0xff] }
 0x14c   : > { %3767 = vmatpush3.bf16.msra.mxu0 %v3766_v5  ;;  %v3540_v36 = vpack.c.bf16 %v5825_v54, %v5824_v33  ;;  %v1988_v63 = vsub.f32 %v5064_v42, %v1987_v23  ;;  %v1995_v58 = vsub.f32 %v5080_v14, %v1994_v25  ;;  %v5826_v62 = vand.u32 4294901760, %v4356_v1  ;;  %v5843_v54 = vld [vmem:[#allocation54_spill] sm:$0xff] }
 0x14d   : > { %3535 = vmatpush3.bf16.msra.mxu1 %v3534_v0  ;;  %3768 = vmatprep.subr.bf16.mxu0 %v5674_v60  ;;  %v5827_v2 = vand.u32 4294901760, %v4362_v50  ;;  %v5828_v29 = vand.u32 4294901760, %v4364_v11  ;;  %v5829_v5 = vand.u32 4294901760, %v4370_v45  ;;  %v3775_v46 = vpack.c.bf16 %v1982_v61, %v1975_v19 }
 0x14e   : > { %3537 = vmatprep.subr.bf16.mxu1 %v3536_v51  ;;  %v1989_v0 = vand.u32 4294901760, %v1988_v63  ;;  %v1996_v52 = vand.u32 4294901760, %v1995_v58  ;;  %v5830_v43 = vand.u32 4294901760, %v4382_v7  ;;  %v5831_v1 = vand.u32 4294901760, %v4384_v21  ;;  %v5837_v7 = vld [vmem:[#allocation51_spill] sm:$0xff]  ;;  %v5848_v63 = vld [vmem:[#allocation48_spill] sm:$0xff] }
 0x14f   : > { %v3542_v10 = vpack.c.bf16 %v5827_v2, %v5826_v62  ;;  %v3544_v17 = vpack.c.bf16 %v5829_v5, %v5828_v29  ;;  %v5832_v50 = vand.u32 4294901760, %v4390_v8  ;;  %v5833_v11 = vand.u32 4294901760, %v4392_v16  ;;  %v5841_v8 = vld [vmem:[#allocation62_spill] sm:$0xff]  ;;  %v5842_v16 = vld [vmem:[#allocation63_spill] sm:$0xff]  ;;  %v5849_v58 = vld [vmem:[#allocation68_spill] sm:$0xff] }
 0x150   : > { %3770 = vmatpush3.bf16.msra.mxu0 %v3769_v53  ;;  %v3546_v51 = vpack.c.bf16 %v5831_v1, %v5830_v43  ;;  %v3778_v45 = vpack.c.bf16 %v1996_v52, %v1989_v0  ;;  %v5834_v35 = vand.u32 4294901760, %v5741_v44  ;;  %v5836_v41 = vand.u32 4294901760, %v5835_v55  ;;  %v5850_v2 = vld [vmem:[#allocation14_spill] sm:$0xff]  ;;  %v5854_v0 = vld [vmem:[#allocation23_spill] sm:$0xff]  ;;  %v5855_v52 = vld [vmem:[#allocation24_spill] sm:$0xff] }
 0x151   : > { %3539 = vmatpush3.bf16.msra.mxu1 %v3538_v59  ;;  %3771 = vmatprep.subr.bf16.mxu0 %v5674_v60  ;;  %v3548_v53 = vpack.c.bf16 %v5833_v11, %v5832_v50  ;;  %v5838_v21 = vand.u32 4294901760, %v5837_v7  ;;  %v5840_v37 = vand.u32 4294901760, %v5839_v28  ;;  %v3781_v33 = vpack.c.bf16 %v5842_v16, %v5841_v8  ;;  %v5852_v5 = vld [vmem:[#allocation18_spill] sm:$0xff]  ;;  %v5857_v1 = vld [vmem:[#allocation29_spill] sm:$0xff]  ;;  %v5869_v28 = vld [vmem:[#allocation15_spill] sm:$0xff] }
 0x152   : > { %3541 = vmatprep.subr.bf16.mxu1 %v3540_v36  ;;  %v3550_v20 = vpack.c.bf16 %v5836_v41, %v5834_v35  ;;  %v5844_v36 = vand.u32 4294901760, %v5843_v54  ;;  %v3784_v62 = vpack.c.bf16 %v5849_v58, %v5848_v63  ;;  %v3787_v29 = vpack.c.bf16 %v4935_v4, %v4921_v13  ;;  %v5858_v50 = vld [vmem:[#allocation33_spill] sm:$0xff]  ;;  %v5859_v11 = vld [vmem:[#allocation34_spill] sm:$0xff]  ;;  %v5861_v35 = vld [vmem:[#allocation39_spill] sm:$0xff] }
 0x153   : > { %v3552_v59 = vpack.c.bf16 %v5840_v37, %v5838_v21  ;;  %v3793_v43 = vpack.c.bf16 %v4985_v34, %v4981_v3  ;;  %v3802_v55 = vpack.c.bf16 %v5080_v14, %v5064_v42  ;;  %v5862_v41 = vld [vmem:[#allocation43_spill] sm:$0xff]  ;;  %v5864_v7 = vld [vmem:[#allocation70_spill] sm:$0xff]  ;;  %v5865_v21 = vld [vmem:[#allocation57_spill] sm:$0xff] }
 0x154   : > { %3773 = vmatpush3.bf16.msra.mxu0 %v3772_v27  ;;  %v5845_v27 = vld [vmem:[#allocation56_spill] sm:$0xff]  ;;  %v5873_v54 = vld [vmem:[#allocation25_spill] sm:$0xff] }
 0x155   : > { %3543 = vmatpush3.bf16.msra.mxu1 %v3542_v10  ;;  %3774 = vmatprep.subr.bf16.mxu0 %v5674_v60  ;;  %v5846_v44 = vand.u32 4294901760, %v5845_v27  ;;  %v5870_v37 = vld [vmem:[#allocation60_spill] sm:$0xff]  ;;  %v5875_v27 = vld [vmem:[#allocation30_spill] sm:$0xff] }
 0x156   : > { %3545 = vmatprep.subr.bf16.mxu1 %v3544_v17  ;;  %v5853_v17 = vld [vmem:[#allocation19_spill] sm:$0xff] }
 0x157   : > { %v3554_v19 = vpack.c.bf16 %v5846_v44, %v5844_v36  ;;  %v5874_v36 = vld [vmem:[#allocation69_spill] sm:$0xff]  ;;  %v5876_v44 = vld [vmem:[#allocation71_spill] sm:$0xff] }
 0x158   : > { %3776 = vmatpush3.bf16.msra.mxu0 %v3775_v46  ;;  %v3790_v46 = vpack.c.bf16 %v4964_v48, %v4952_v49 }
 0x159   : > { %3547 = vmatpush3.bf16.msra.mxu1 %v3546_v51  ;;  %3777 = vmatprep.subr.bf16.mxu0 %v5674_v60  ;;  %v3796_v51 = vpack.c.bf16 %v5011_v38, %v5001_v18  ;;  %v3847_v38 = vpack.c.bf16 %v1980_v40, %v1973_v12  ;;  %v3850_v12 = vpack.c.bf16 %v1994_v25, %v1987_v23 }
 0x15a   : > { %3549 = vmatprep.subr.bf16.mxu1 %v3548_v53  ;;  %v3799_v53 = vpack.c.bf16 %v5049_v26, %v5032_v15 }
 0x15c   : > { %3779 = vmatpush3.bf16.msra.mxu0 %v3778_v45  ;;  %v5860_v45 = vld [vmem:[#allocation38_spill] sm:$0xff] }
 0x15d   : > { %3551 = vmatpush3.bf16.msra.mxu1 %v3550_v20  ;;  %3780 = vmatprep.subr.bf16.mxu0 %v5674_v60  ;;  %v5863_v20 = vld [vmem:[#allocation52_spill] sm:$0xff] }
 0x15e   : > { %3553 = vmatprep.subr.bf16.mxu1 %v3552_v59  ;;  %v5871_v59 = vld [vmem:[#allocation20_spill] sm:$0xff] }
 0x15f   : > { %3254 = vmatmul.mubr.msk.f32.vlgmr.msra.gmra.mrb[0].mxu0 %vm4874_vm6, %v5718_v6 }
 0x160   : > { %3782 = vmatpush3.bf16.msra.mxu0 %v3781_v33  ;;  %3288 = vmatprep.mubr.msk.f32.mxu0 %vm4101_vm0, %v5703_v57  ;;  %v5872_v33 = vld [vmem:[#allocation64_spill] sm:$0xff] }
 0x161   : > { %3555 = vmatpush3.bf16.msra.mxu1 %v3554_v19  ;;  %3783 = vmatprep.subr.bf16.mxu0 %v5674_v60  ;;  %v5877_v19 = vld [vmem:[#allocation35_spill] sm:$0xff] }
 0x162   : > { %3557 = vmatprep.subr.bf16.mxu1 %v5850_v2 }
 0x164   : > { %2549 = vmatmul.mubr.msk.f32.vlgmr.msra.gmra.mrb[8].mxu1 %vm219_vm1, %v5718_v6  ;;  %3785 = vmatpush3.bf16.msra.mxu0 %v3784_v62  ;;  %v5878_v62 = vld [vmem:[#allocation11_spill] sm:$0xff] }
 0x165   : > { %3559 = vmatpush3.bf16.msra.mxu1 %v5852_v5  ;;  %2550 = vmatprep.mubr.msk.f32.mxu1 %vm220_vm2, %v5718_v6  ;;  %v5879_v2 = vand.u32 4294901760, %v5878_v62 }
 0x166   : > { %3786 = vmatprep.subr.bf16.mxu0 %v5674_v60  ;;  %3561 = vmatprep.subr.bf16.mxu1 %v5853_v17 }
 0x167   : > { %v1249_v10 = vsub.f32 %v5878_v62, %v5879_v2  ;;  %v5897_v2 = vld [vmem:[#allocation22_spill] sm:$0xff] }
 0x168   : > { %3788 = vmatpush3.bf16.msra.mxu0 %v3787_v29  ;;  %v5880_v29 = vld [vmem:[#allocation13_spill] sm:$0xff] }
 0x169   : > { %3563 = vmatpush3.bf16.msra.mxu1 %v5854_v0  ;;  %3789 = vmatprep.subr.bf16.mxu0 %v5674_v60  ;;  %v5881_v5 = vand.u32 4294901760, %v5880_v29  ;;  %v5883_v0 = vand.u32 4294901760, %v5841_v8  ;;  %v3637_v42 = vpack.c.bf16 %v5880_v29, %v5878_v62 }
 0x16a   : > { %3565 = vmatprep.subr.bf16.mxu1 %v5855_v52  ;;  %v5884_v52 = vand.u32 4294901760, %v5842_v16  ;;  %v5892_v16 = vand.u32 4294901760, %v5864_v7 }
 0x16b   : > { %v1256_v17 = vsub.f32 %v5880_v29, %v5881_v5 }
 0x16c   : > { %3791 = vmatpush3.bf16.msra.mxu0 %v3790_v46  ;;  %v5882_v46 = vld [vmem:[#allocation72_spill] sm:$0xff] }
 0x16d   : > { %3567 = vmatpush3.bf16.msra.mxu1 %v5856_v22  ;;  %3792 = vmatprep.subr.bf16.mxu0 %v5674_v60  ;;  %v5885_v22 = vld [vmem:[#allocation40_spill] sm:$0xff] }
 0x16e   : > { %3569 = vmatprep.subr.bf16.mxu1 %v5857_v1  ;;  %v1250_v1 = vand.u32 4294901760, %v1249_v10  ;;  %v5898_v10 = vand.u32 4294901760, %v5897_v2 }
 0x170   : > { %3794 = vmatpush3.bf16.msra.mxu0 %v3793_v43  ;;  %v3829_v43 = vpack.c.bf16 %v5884_v52, %v5883_v0  ;;  %v1284_v5 = vsub.f32 %v5897_v2, %v5898_v10  ;;  %v5900_v52 = vand.u32 4294901760, %v4921_v13  ;;  %v5907_v13 = vand.u32 4294901760, %v4964_v48 }
 0x171   : > { %3571 = vmatpush3.bf16.msra.mxu1 %v5858_v50  ;;  %3795 = vmatprep.subr.bf16.mxu0 %v5674_v60  ;;  %v5886_v50 = vld [vmem:[#allocation16_spill] sm:$0xff]  ;;  %v3841_v48 = vpack.c.bf16 %v1952_v30, %v1945_v39  ;;  %v3844_v30 = vpack.c.bf16 %v1966_v31, %v1959_v47 }
 0x172   : > { %3573 = vmatprep.subr.bf16.mxu1 %v5859_v11  ;;  %v5887_v11 = vand.u32 4294901760, %v5886_v50 }
 0x174   : > { %3797 = vmatpush3.bf16.msra.mxu0 %v3796_v51  ;;  %v1257_v51 = vand.u32 4294901760, %v1256_v17  ;;  %v5899_v17 = vld [vmem:[#allocation46_spill] sm:$0xff] }
 0x175   : > { %3575 = vmatpush3.bf16.msra.mxu1 %v5860_v45  ;;  %3798 = vmatprep.subr.bf16.mxu0 %v5674_v60  ;;  %v5888_v45 = vld [vmem:[#allocation17_spill] sm:$0xff] }
 0x176   : > { %3577 = vmatprep.subr.bf16.mxu1 %v5861_v35  ;;  %v5889_v35 = vand.u32 4294901760, %v5888_v45  ;;  %v3640_v23 = vpack.c.bf16 %v5888_v45, %v5886_v50 }
 0x178   : > { %3800 = vmatpush3.bf16.msra.mxu0 %v3799_v53  ;;  %v1263_v53 = vsub.f32 %v5886_v50, %v5887_v11 }
 0x179   : > { %3579 = vmatpush3.bf16.msra.mxu1 %v5862_v41  ;;  %3801 = vmatprep.subr.bf16.mxu0 %v5674_v60  ;;  %v5890_v41 = vld [vmem:[#allocation67_spill] sm:$0xff] }
 0x17a   : > { %3581 = vmatprep.subr.bf16.mxu1 %v5793_v24  ;;  %v5867_v24 = vld [vmem:[#allocation12_spill] sm:$0xff] }
 0x17c   : > { %3803 = vmatpush3.bf16.msra.mxu0 %v3802_v55  ;;  %v1270_v55 = vsub.f32 %v5888_v45, %v5889_v35  ;;  %v1285_v35 = vand.u32 4294901760, %v1284_v5 }
 0x17d   : > { %3583 = vmatpush3.bf16.msra.mxu1 %v5796_v32  ;;  %3804 = vmatprep.subr.bf16.mxu0 %v5674_v60  ;;  %v5866_v32 = vld [vmem:[#allocation58_spill] sm:$0xff] }
 0x17e   : > { %3585 = vmatprep.subr.bf16.mxu1 %v5863_v20  ;;  %v5891_v20 = vand.u32 4294901760, %v5890_v41  ;;  %v1271_v0 = vand.u32 4294901760, %v1270_v55 }
 0x17f   : > { %3289 = vmatmul.mubr.f32.vlgmr.msra.gmra.mrb[0].mxu0 %v5864_v7  ;;  %v3613_v7 = vpack.c.bf16 %v1257_v51, %v1250_v1 }
 0x180   : > { %3806 = vmatpush3.bf16.msra.mxu0 %v5865_v21  ;;  %3323 = vmatprep.mubr.msk.f32.mxu0 %vm4101_vm0, %v5703_v57  ;;  %v1238_v8 = vsub.f32 %v5890_v41, %v5891_v20 }
 0x181   : > { %3587 = vmatpush3.bf16.msra.mxu1 %v5804_v56  ;;  %3807 = vmatprep.subr.bf16.mxu0 %v5674_v60  ;;  %v5868_v56 = vld [vmem:[#allocation59_spill] sm:$0xff] }
 0x182   : > { %3588 = vmatprep.subr.bf16.mxu1 %v5674_v60 }
 0x184   : > { %2551 = vmatmul.mubr.msk.f32.vlgmr.msra.gmra.mrb[10].mxu1 %vm219_vm1, %v5718_v6  ;;  %3809 = vmatpush3.bf16.msra.mxu0 %v5866_v32 }
 0x185   : > { %3590 = vmatpush3.bf16.msra.mxu1 %v5867_v24  ;;  %3810 = vmatprep.subr.bf16.mxu0 %v5674_v60  ;;  %v5893_v24 = vand.u32 4294901760, %v5848_v63  ;;  %v1264_v63 = vand.u32 4294901760, %v1263_v53  ;;  %v5904_v53 = vld [vmem:[#allocation27_spill] sm:$0xff] }
 0x186   : > { %3591 = vmatprep.subr.bf16.mxu1 %v5674_v60  ;;  %3008 = vmatprep.mubr.msk.f32.mxu1 %vm4101_vm0, %v5703_v57  ;;  %v5905_v55 = vand.u32 4294901760, %v5904_v53 }
 0x187   : > { %v3616_v20 = vpack.c.bf16 %v1271_v0, %v1264_v63 }
 0x188   : > { %3812 = vmatpush3.bf16.msra.mxu0 %v5868_v56 }
 0x189   : > { %3593 = vmatpush3.bf16.msra.mxu1 %v5869_v28  ;;  %3813 = vmatprep.subr.bf16.mxu0 %v5674_v60  ;;  %v5894_v28 = vand.u32 4294901760, %v5849_v58  ;;  %v1239_v58 = vand.u32 4294901760, %v1238_v8  ;;  %v1298_v8 = vsub.f32 %v5904_v53, %v5905_v55 }
 0x18a   : > { %3594 = vmatprep.subr.bf16.mxu1 %v5674_v60 }
 0x18c   : > { %3815 = vmatpush3.bf16.msra.mxu0 %v5870_v37 }
 0x18d   : > { %3596 = vmatpush3.bf16.msra.mxu1 %v5871_v59  ;;  %3816 = vmatprep.subr.bf16.mxu0 %v5674_v60  ;;  %v3832_v59 = vpack.c.bf16 %v5894_v28, %v5893_v24 }
 0x18e   : > { %3597 = vmatprep.subr.bf16.mxu1 %v5674_v60 }
 0x190   : > { %3818 = vmatpush3.bf16.msra.mxu0 %v5872_v33 }
 0x191   : > { %3599 = vmatpush3.bf16.msra.mxu1 %v5873_v54  ;;  %3819 = vmatprep.subr.bf16.mxu0 %v5674_v60  ;;  %v5895_v54 = vld [vmem:[#allocation21_spill] sm:$0xff] }
 0x192   : > { %3600 = vmatprep.subr.bf16.mxu1 %v5674_v60  ;;  %v3643_v9 = vpack.c.bf16 %v5897_v2, %v5895_v54 }
 0x194   : > { %3821 = vmatpush3.bf16.msra.mxu0 %v5874_v36 }
 0x195   : > { %3602 = vmatpush3.bf16.msra.mxu1 %v5875_v27  ;;  %3822 = vmatprep.subr.bf16.mxu0 %v5674_v60  ;;  %v5896_v27 = vand.u32 4294901760, %v5895_v54 }
 0x196   : > { %3603 = vmatprep.subr.bf16.mxu1 %v5674_v60 }
 0x198   : > { %3824 = vmatpush3.bf16.msra.mxu0 %v5876_v44 }
 0x199   : > { %3605 = vmatpush3.bf16.msra.mxu1 %v5877_v19  ;;  %3825 = vmatprep.subr.bf16.mxu0 %v5674_v60  ;;  %v1277_v19 = vsub.f32 %v5895_v54, %v5896_v27  ;;  %v1299_v27 = vand.u32 4294901760, %v1298_v8  ;;  %v5918_v8 = vld [vmem:[#allocation42_spill] sm:$0xff] }
 0x19a   : > { %3606 = vmatprep.subr.bf16.mxu1 %v5674_v60 }
 0x19b   : > { %v1278_v11 = vand.u32 4294901760, %v1277_v19  ;;  %v5908_v19 = vld [vmem:[#allocation31_spill] sm:$0xff] }
 0x19c   : > { %3827 = vmatpush3.bf16.msra.mxu0 %v5882_v46  ;;  %v5909_v10 = vand.u32 4294901760, %v5908_v19 }
 0x19d   : > { %3608 = vmatpush3.bf16.msra.mxu1 %v5885_v22  ;;  %3828 = vmatprep.subr.bf16.mxu0 %v5674_v60  ;;  %v3619_v28 = vpack.c.bf16 %v1285_v35, %v1278_v11 }
 0x19e   : > { %3609 = vmatprep.subr.bf16.mxu1 %v5674_v60  ;;  %v1305_v5 = vsub.f32 %v5908_v19, %v5909_v10 }
 0x19f   : > { %3324 = vmatmul.mubr.f32.vlgmr.msra.gmra.mrb[0].mxu0 %v5892_v16  ;;  %v5902_v16 = vld [vmem:[#allocation26_spill] sm:$0xff] }
 0x1a0   : > { %3830 = vmatpush3.bf16.msra.mxu0 %v3829_v43  ;;  %3358 = vmatprep.mubr.msk.f32.mxu0 %vm4101_vm0, %v5703_v57  ;;  %v5901_v43 = vand.u32 4294901760, %v4935_v4  ;;  %v5903_v1 = vand.u32 4294901760, %v5902_v16  ;;  %v5906_v4 = vand.u32 4294901760, %v4952_v49  ;;  %v5912_v49 = vld [vmem:[#allocation36_spill] sm:$0xff]  ;;  %v1306_v35 = vand.u32 4294901760, %v1305_v5 }
 0x1a1   : > { %3611 = vmatpush3.bf16.msra.mxu1 %v5899_v17  ;;  %3831 = vmatprep.subr.bf16.mxu0 %v5674_v60  ;;  %v5910_v17 = vld [vmem:[#allocation32_spill] sm:$0xff]  ;;  %v5913_v0 = vand.u32 4294901760, %v5912_v49  ;;  %v3646_v25 = vpack.c.bf16 %v5904_v53, %v5902_v16 }
 0x1a2   : > { %3612 = vmatprep.subr.bf16.mxu1 %v5674_v60  ;;  %v3835_v22 = vpack.c.bf16 %v5901_v43, %v5900_v52  ;;  %v1291_v51 = vsub.f32 %v5902_v16, %v5903_v1  ;;  %v3838_v24 = vpack.c.bf16 %v5907_v13, %v5906_v4  ;;  %v5914_v52 = vld [vmem:[#allocation37_spill] sm:$0xff]  ;;  %v5919_v4 = vand.u32 4294901760, %v5918_v8 }
 0x1a3   : > { %v5915_v43 = vand.u32 4294901760, %v5914_v52  ;;  %v5916_v1 = vld [vmem:[#allocation41_spill] sm:$0xff] }
 0x1a4   : > { %3009 = vmatmul.mubr.f32.vlgmr.msra.gmra.mrb[12].mxu1 %v1239_v58  ;;  %3833 = vmatpush3.bf16.msra.mxu0 %v3832_v59  ;;  %v1292_v59 = vand.u32 4294901760, %v1291_v51  ;;  %v1319_v58 = vsub.f32 %v5912_v49, %v5913_v0  ;;  %v5917_v51 = vand.u32 4294901760, %v5916_v1  ;;  %v1340_v13 = vsub.f32 %v5918_v8, %v5919_v4 }
 0x1a5   : > { %3614 = vmatpush3.bf16.msra.mxu1 %v3613_v7  ;;  %3834 = vmatprep.subr.bf16.mxu0 %v5674_v60  ;;  %v5911_v7 = vand.u32 4294901760, %v5910_v17 }
 0x1a6   : > { %3615 = vmatprep.subr.bf16.mxu1 %v5674_v60  ;;  %3043 = vmatprep.mubr.msk.f32.mxu1 %vm4101_vm0, %v5703_v57  ;;  %v3622_v11 = vpack.c.bf16 %v1299_v27, %v1292_v59  ;;  %v1320_v3 = vand.u32 4294901760, %v1319_v58  ;;  %v1333_v55 = vsub.f32 %v5916_v1, %v5917_v51  ;;  %v1341_v31 = vand.u32 4294901760, %v1340_v13  ;;  %v5922_v27 = vld [vmem:[#allocation47_spill] sm:$0xff] }
 0x1a7   : > { %v1312_v63 = vsub.f32 %v5910_v17, %v5911_v7  ;;  %v5923_v10 = vand.u32 4294901760, %v5922_v27 }
 0x1a8   : > { %3836 = vmatpush3.bf16.msra.mxu0 %v3835_v22  ;;  %v1326_v22 = vsub.f32 %v5914_v52, %v5915_v43  ;;  %v1334_v47 = vand.u32 4294901760, %v1333_v55 }
 0x1a9   : > { %3617 = vmatpush3.bf16.msra.mxu1 %v3616_v20  ;;  %3837 = vmatprep.subr.bf16.mxu0 %v5674_v60  ;;  %v1313_v20 = vand.u32 4294901760, %v1312_v63  ;;  %v1354_v5 = vsub.f32 %v5922_v27, %v5923_v10 }
 0x1aa   : > { %3618 = vmatprep.subr.bf16.mxu1 %v5674_v60  ;;  %v1327_v34 = vand.u32 4294901760, %v1326_v22  ;;  %v3631_v7 = vpack.c.bf16 %v1341_v31, %v1334_v47 }
 0x1ab   : > { %v3625_v39 = vpack.c.bf16 %v1313_v20, %v1306_v35 }
 0x1ac   : > { %3839 = vmatpush3.bf16.msra.mxu0 %v3838_v24  ;;  %v3628_v18 = vpack.c.bf16 %v1327_v34, %v1320_v3  ;;  %v5920_v24 = vld [vmem:[#allocation45_spill] sm:$0xff] }
 0x1ad   : > { %3620 = vmatpush3.bf16.msra.mxu1 %v3619_v28  ;;  %3840 = vmatprep.subr.bf16.mxu0 %v5674_v60  ;;  %v5921_v28 = vand.u32 4294901760, %v5920_v24  ;;  %v3658_v62 = vpack.c.bf16 %v5922_v27, %v5920_v24 }
 0x1ae   : > { %3621 = vmatprep.subr.bf16.mxu1 %v5674_v60 }
 0x1af   : > { %v1347_v59 = vsub.f32 %v5920_v24, %v5921_v28 }
 0x1b0   : > { %3842 = vmatpush3.bf16.msra.mxu0 %v3841_v48  ;;  %v1355_v48 = vand.u32 4294901760, %v1354_v5 }
 0x1b1   : > { %3623 = vmatpush3.bf16.msra.mxu1 %v3622_v11  ;;  %3843 = vmatprep.subr.bf16.mxu0 %v5674_v60  ;;  %v1348_v63 = vand.u32 4294901760, %v1347_v59 }
 0x1b2   : > { %3624 = vmatprep.subr.bf16.mxu1 %v5674_v60 }
 0x1b3   : > { %v3634_v0 = vpack.c.bf16 %v1355_v48, %v1348_v63 }
 0x1b4   : > { %3845 = vmatpush3.bf16.msra.mxu0 %v3844_v30 }
 0x1b5   : > { %3626 = vmatpush3.bf16.msra.mxu1 %v3625_v39  ;;  %3846 = vmatprep.subr.bf16.mxu0 %v5674_v60 }
 0x1b6   : > { %3627 = vmatprep.subr.bf16.mxu1 %v5674_v60 }
 0x1b7   : > { %v2594_v15 = vpop.f32.mrb[0].mxu1 }
 0x1b8   : > { %3848 = vmatpush3.bf16.msra.mxu0 %v3847_v38  ;;  %v2595_v26 = vpop.f32.mrb[1].mxu1 }
 0x1b9   : > { %v2596_v40 = vadd.f32 %v2595_v26, %v2594_v15  ;;  %3629 = vmatpush3.bf16.msra.mxu1 %v3628_v18  ;;  %3849 = vmatprep.subr.bf16.mxu0 %v5674_v60 }
 0x1ba   : > { %3630 = vmatprep.subr.bf16.mxu1 %v5674_v60 }
 0x1bc   : > { %3851 = vmatpush3.bf16.msra.mxu0 %v3850_v12 }
 0x1bd   : > { %3632 = vmatpush3.bf16.msra.mxu1 %v3631_v7  ;;  %3852 = vmatprep.subr.bf16.mxu0 %v5674_v60 }
 0x1be   : > { %3633 = vmatprep.subr.bf16.mxu1 %v5674_v60 }
 0x1bf   : > { %3359 = vmatmul.mubr.msk.f32.vlgmr.msra.gmra.mrb[0].mxu0 %vm4874_vm6, %v5718_v6 }
 0x1c0   : > { %3854 = vmatpush3.bf16.msra.mxu0 %v5865_v21  ;;  %3393 = vmatprep.mubr.msk.f32.mxu0 %vm4101_vm0, %v5703_v57  ;;  %v3652_v21 = vpack.c.bf16 %v5914_v52, %v5912_v49 }
 0x1c1   : > { %3635 = vmatpush3.bf16.msra.mxu1 %v3634_v0  ;;  %3855 = vmatprep.subr.bf16.mxu0 %v5674_v60 }
 0x1c2   : > { %3636 = vmatprep.subr.bf16.mxu1 %v5674_v60 }
 0x1c4   : > { %3044 = vmatmul.mubr.msk.f32.vlgmr.msra.gmra.mrb[12].mxu1 %vm221_vm3, %v5718_v6  ;;  %3857 = vmatpush3.bf16.msra.mxu0 %v5866_v32 }
 0x1c5   : > { %3638 = vmatpush3.bf16.msra.mxu1 %v3637_v42  ;;  %3858 = vmatprep.subr.bf16.mxu0 %v5674_v60 }
 0x1c6   : > { %3639 = vmatprep.subr.bf16.mxu1 %v5674_v60  ;;  %3078 = vmatprep.mubr.msk.f32.mxu1 %vm4101_vm0, %v5703_v57  ;;  %v3649_v57 = vpack.c.bf16 %v5910_v17, %v5908_v19 }
 0x1c8   : > { %3860 = vmatpush3.bf16.msra.mxu0 %v5868_v56 }
 0x1c9   : > { %3641 = vmatpush3.bf16.msra.mxu1 %v3640_v23  ;;  %3861 = vmatprep.subr.bf16.mxu0 %v5674_v60 }
 0x1ca   : > { %3642 = vmatprep.subr.bf16.mxu1 %v5674_v60 }
 0x1cc   : > { %3863 = vmatpush3.bf16.msra.mxu0 %v5870_v37 }
 0x1cd   : > { %3644 = vmatpush3.bf16.msra.mxu1 %v3643_v9  ;;  %3864 = vmatprep.subr.bf16.mxu0 %v5674_v60 }
 0x1ce   : > { %3645 = vmatprep.subr.bf16.mxu1 %v5674_v60 }
 0x1d0   : > { %3866 = vmatpush3.bf16.msra.mxu0 %v5872_v33  ;;  %v3655_v33 = vpack.c.bf16 %v5918_v8, %v5916_v1 }
 0x1d1   : > { %3647 = vmatpush3.bf16.msra.mxu1 %v3646_v25  ;;  %3867 = vmatprep.subr.bf16.mxu0 %v5674_v60 }
 0x1d2   : > { %3648 = vmatprep.subr.bf16.mxu1 %v5674_v60 }
 0x1d4   : > { %3869 = vmatpush3.bf16.msra.mxu0 %v5874_v36 }
 0x1d5   : > { %3650 = vmatpush3.bf16.msra.mxu1 %v3649_v57  ;;  %3870 = vmatprep.subr.bf16.mxu0 %v5674_v60 }
 0x1d6   : > { %3651 = vmatprep.subr.bf16.mxu1 %v5674_v60 }
 0x1d7   : > { %v2629_v32 = vpop.f32.mrb[2].mxu1 }
 0x1d8   : > { %v2630_v56 = vpop.f32.mrb[3].mxu1  ;;  %3872 = vmatpush3.bf16.msra.mxu0 %v5876_v44 }
 0x1d9   : > { %v2631_v37 = vadd.f32 %v2630_v56, %v2629_v32  ;;  %3653 = vmatpush3.bf16.msra.mxu1 %v3652_v21  ;;  %3873 = vmatprep.subr.bf16.mxu0 %v5674_v60 }
 0x1da   : > { %3654 = vmatprep.subr.bf16.mxu1 %v5674_v60 }
 0x1db   : > { %v633_v36 = vadd.f32 %v2631_v37, %v2596_v40 }
 0x1dc   : > { %3875 = vmatpush3.bf16.msra.mxu0 %v5882_v46 }
 0x1dd   : > { %3656 = vmatpush3.bf16.msra.mxu1 %v3655_v33 }
 0x1de   : > { %3657 = vmatprep.subr.bf16.mxu1 %v5674_v60 }
 0x1df   : > { %3394 = vmatmul.mubr.msk.f32.vlgmr.msra.gmra.mrb[0].mxu0 %vm4874_vm6, %v5718_v6 }
 0x1e1   : > { %3659 = vmatpush3.bf16.msra.mxu1 %v3658_v62 }
 0x1e4   : > { %3079 = vmatmul.mubr.f32.vlgmr.msra.gmra.mrb[12].mxu1 %v5890_v41 }
 0x1f7   : > { %v2664_v44 = vpop.f32.mrb[4].mxu1 }
 0x1f8   : > { %v2665_v29 = vpop.f32.mrb[5].mxu1 }
 0x1f9   : > { %v2666_v50 = vadd.f32 %v2665_v29, %v2664_v44 }
 0x1fb   : > { %v771_v45 = vadd.f32 %v2666_v50, %v633_v36 }
 0x217   : > { %v2699_v54 = vpop.f32.mrb[6].mxu1 }
 0x218   : > { %v2700_v46 = vpop.f32.mrb[7].mxu1 }
 0x219   : > { %v2701_v2 = vadd.f32 %v2700_v46, %v2699_v54 }
 0x21b   : > { %v879_v16 = vadd.f32 %v2701_v2, %v771_v45 }
 0x237   : > { %v2734_v53 = vpop.f32.mrb[8].mxu1 }
 0x238   : > { %v2735_v19 = vpop.f32.mrb[9].mxu1 }
 0x239   : > { %v2736_v60 = vadd.f32 %v2735_v19, %v2734_v53 }
 0x23b   : > { %v1047_v17 = vadd.f32 %v2736_v60, %v879_v16 }
 0x257   : > { %v2769_v49 = vpop.f32.mrb[10].mxu1 }
 0x258   : > { %v2770_v61 = vpop.f32.mrb[11].mxu1 }
 0x259   : > { %v2771_v6 = vadd.f32 %v2770_v61, %v2769_v49 }
 0x25b   : > { %v1151_v58 = vadd.f32 %v2771_v6, %v1047_v17 }
 0x2b2   : > { %v2432_v41 = vpop.f32.mrb[0].mxu0 }
 0x2b3   : > { %v3395_v52 = vpop.f32.mrb[1].mxu0 }
 0x2b7   : > { %v1496_v43 = vpop.f32.mrb[12].mxu1 }
 0x2b8   : > { %v3876_v22 = vadd.f32 %v1496_v43, %v1151_v58  ;;  %v3080_v11 = vpop.f32.mrb[13].mxu1 }
 0x2ba   : > { %v3877_v35 = vadd.f32 %v3876_v22, %v2432_v41 }
 0x2bc   : > { %2436 = vst [vmem:[%s191_s25] sm:$0xff] %v3877_v35 }
 0x2bd   : > { %4036 = shalt.err (!%p4033_p11)
}
 0x2be   : > { %s4037_s9 = scalar_lea.hbm %s5406_s5, 128  ;;  %s4041_s29 = scalar_lea.hbm %s5451_s3, 256 }
 0x2bf   : > { %p4038_p13 = scmp.ne.s32.totalorder %s5406_s5, %s4037_s9  ;;  %p4042_p6 = scmp.lt.u32.totalorder %s5406_s5, %s5451_s3 }
 0x2c0   : > { %p4043_p9 = scmp.lt.u32.totalorder %s4041_s29, %s4037_s9  ;;  %p4045_p12 = scmp.lt.u32.totalorder %s4037_s9, %s5406_s5 }
 0x2c1   : > { %p4039_p5 = pnand %p4038_p13, %p5925_p1 }
 0x2c2   : > { %p4044_p10 = por %p4043_p9, %p4042_p6 }
 0x2c3   : > { %p4040_p0 = pneg %p4039_p5 }
 0x2c4   : > { %p4046_p2 = por %p4045_p12, %p4044_p10 }
 0x2c6   : > { %p4047_p3 = pnand %p4046_p2, %p4040_p0 }
 0x2c8   : > { %4050 = shalt.err (!%p4047_p3)
}
 0x2c9   : > { %3906 = dma.vmem_to_hbm [thread:$0]  (%p5925_p1), %s5408_s28, 128, %s5406_s5, %s2438_s6  }
 0x2ca PF: > { %p3923_p4 = scmp.ge.s32.totalorder %s4093_s15, 2  ;;  %s2463_s17 = sand.u32 1, %s4081_s12  }
 0x2cb   : > { %p5926_p7 = scmp.ne.s32.totalorder %s5638_s23, 0  ;;  %s2464_s19 = scalar_lea.sflag [#allocation4], %s2463_s17 }
 0x2cd   : > { %p3916_p8 = pnand %p3923_p4, %p5926_p7 }
 0x2cf   : > { %4076 = dma.done.wait (!%p3916_p8), %s2464_s19, 128  }
 0x2d0   : > { %4078 = vsyncadd (!%p3916_p8), %s2464_s19, 4294967168  ;;  %p15_p11 = scmp.ge.s32.totalorder %s4150_s18, 4   ;;  %s5927_s12 = smov %s4085_s13 }
 0x2d1   : > { %s5928_s13 = smov %s4089_s14  ;;  %s5929_s14 = smov %s4161_s21 }
 0x2d2   : > { %s5930_s15 = smov %s4150_s18  ;;  %17 = sbr.rel (!%p15_p11) target bundleno = 5 (0x5), region = 76 }
 0x2d9   :  { %2469 = vsyncpa [#allocation3], 1 }
 0x2da   :  { %2471 = vsyncpa [#allocation3 + $0x1], 1 }
 0x2db   :  { %2472 = vsyncpa [#allocation6], 1 }
 0x2dc   :  { %2473 = vsyncpa [#allocation4], 1 }
 0x2dd   :  { %2475 = vsyncpa [#allocation4 + $0x1], 1 }

</bundles_post_ra>
